<compile_context>
chip_gen: v7x
topology: tpu7x:2x2x1
jax: 0.10.0
libtpu: 0.0.40
codegen_flags: <defaults>
</compile_context>

<pallas_src>
import functools

import jax
import jax.numpy as jnp
from jax.experimental import pallas as pl
from jax.experimental.pallas import tpu as pltpu


NEG_INF = -1e30  # large negative *finite* value for padded vocab columns


def _round_up(x, m):
    return (x + m - 1) // m * m


# ----------------------------------------------------------------------------
# Kernels
# ----------------------------------------------------------------------------

def _online_nll_step(h_bf16, w_ref, b_ref, t_ref, o_ref, m_sc, l_sc, s_sc, *, tv):
    """One (M-tile, vocab-tile) step of the fused log-softmax NLL."""
    j = pl.program_id(1)

    # logits tile [TM, TV]: contract the last dim of both operands (== x @ w.T).
    # bf16 inputs, f32 MXU accumulation; bias add in f32.
    logits = jax.lax.dot_general(
        h_bf16, w_ref[...],
        dimension_numbers=(((1,), (1,)), ((), ())),
        preferred_element_type=jnp.float32,
    ) + b_ref[...]

    @pl.when(j == 0)
    def _init():
        m_sc[...] = jnp.full_like(m_sc, NEG_INF)
        l_sc[...] = jnp.zeros_like(l_sc)
        s_sc[...] = jnp.zeros_like(s_sc)

    # Accumulate the target logit; the matching column lives in exactly one
    # vocab tile.  Out-of-range targets simply contribute 0.
    col = j * tv + jax.lax.broadcasted_iota(jnp.int32, logits.shape, 1)
    hit = col == t_ref[...]
    s_sc[...] += jnp.sum(jnp.where(hit, logits, 0.0), axis=-1, keepdims=True)

    # Online logsumexp, all in f32.
    m_old = m_sc[...]
    m_new = jnp.maximum(m_old, jnp.max(logits, axis=-1, keepdims=True))
    l_sc[...] = l_sc[...] * jnp.exp(m_old - m_new) + jnp.sum(
        jnp.exp(logits - m_new), axis=-1, keepdims=True)
    m_sc[...] = m_new

    @pl.when(j == pl.num_programs(1) - 1)
    def _finalize():
        # nll = logsumexp(logits) - logit[target]
        o_ref[...] = (m_sc[...] + jnp.log(l_sc[...])) - s_sc[...]


def _nll_kernel(h_ref, w_ref, b_ref, t_ref, o_ref, m_sc, l_sc, s_sc, *, tv):
    _online_nll_step(h_ref[...], w_ref, b_ref, t_ref, o_ref,
                     m_sc, l_sc, s_sc, tv=tv)


def _nll_proj_kernel(h_ref, p_ref, w_ref, b_ref, t_ref, o_ref,
                     ph_sc, m_sc, l_sc, s_sc, *, tv):
    @pl.when(pl.program_id(1) == 0)
    def _project():
        # hidden @ proj == F.linear(hidden, proj.t()); computed once per M tile
        # and kept resident in VMEM across all vocab tiles.
        ph_sc[...] = jnp.dot(h_ref[...], p_ref[...],
                             preferred_element_type=jnp.float32).astype(ph_sc.dtype)

    _online_nll_step(ph_sc[...], w_ref, b_ref, t_ref, o_ref,
                     m_sc, l_sc, s_sc, tv=tv)


# ----------------------------------------------------------------------------
# Wrapper
# ----------------------------------------------------------------------------

def projected_adaptive_log_softmax(hidden, target, weight, bias, proj=None,
                                   *, tile_m=256, tile_v=128):
    """Pallas ProjectedAdaptiveLogSoftmax.forward (n_clusters == 0 path).

    hidden : [M, d_proj] float      target : [M] int
    weight : [n_token, d_embed]     bias   : [n_token]
    proj   : [d_proj, d_embed] or None (None requires d_proj == d_embed)
    returns: nll [M] float32
    """
    if hidden.shape[0] != target.shape[0]:
        raise RuntimeError(
            "Input and target should have the same size in the batch dimension.")
    M, d_proj = hidden.shape
    V, d_embed = weight.shape
    if proj is None and d_proj != d_embed:
        raise ValueError("proj is required when d_proj != d_embed")

    # Tile sizes & padding (row tile multiple of 8, vocab tile multiple of 128).
    tm = min(tile_m, _round_up(M, 8))
    tv = tile_v
    m_pad = _round_up(M, tm)
    v_pad = _round_up(V, tv)

    h_p = jnp.zeros((m_pad, d_proj), jnp.bfloat16).at[:M].set(
        hidden.astype(jnp.bfloat16))
    t_p = jnp.zeros((m_pad, 1), jnp.int32).at[:M, 0].set(target.astype(jnp.int32))
    w_p = jnp.zeros((v_pad, d_embed), jnp.bfloat16).at[:V].set(
        weight.astype(jnp.bfloat16))
    # Padded vocab columns get a finite "-inf" bias so they contribute nothing.
    b_p = jnp.full((1, v_pad), NEG_INF, jnp.float32).at[0, :V].set(
        bias.astype(jnp.float32))

    grid = (m_pad // tm, v_pad // tv)

    in_specs = [pl.BlockSpec((tm, d_proj), lambda i, j: (i, 0))]    # hidden
    args = [h_p]
    scratch = []
    if proj is not None:
        in_specs.append(pl.BlockSpec((d_proj, d_embed), lambda i, j: (0, 0)))
        args.append(proj.astype(jnp.bfloat16))
        scratch.append(pltpu.VMEM((tm, d_embed), jnp.bfloat16))     # proj_hid
        kernel = functools.partial(_nll_proj_kernel, tv=tv)
    else:
        kernel = functools.partial(_nll_kernel, tv=tv)

    in_specs += [
        pl.BlockSpec((tv, d_embed), lambda i, j: (j, 0)),           # weight tile
        pl.BlockSpec((1, tv), lambda i, j: (0, j)),                 # bias tile
        pl.BlockSpec((tm, 1), lambda i, j: (i, 0)),                 # target tile
    ]
    args += [w_p, b_p, t_p]
    scratch += [
        pltpu.VMEM((tm, 1), jnp.float32),                           # running max
        pltpu.VMEM((tm, 1), jnp.float32),                           # running sum-exp
        pltpu.VMEM((tm, 1), jnp.float32),                           # target logit
    ]

    out = pl.pallas_call(
        kernel,
        grid=grid,
        in_specs=in_specs,
        out_specs=pl.BlockSpec((tm, 1), lambda i, j: (i, 0)),
        out_shape=jax.ShapeDtypeStruct((m_pad, 1), jnp.float32),
        scratch_shapes=scratch,
        compiler_params=pltpu.CompilerParams(
            dimension_semantics=("parallel", "arbitrary"),
            vmem_limit_bytes=32 * 1024 * 1024,
        ),
    )(*args)
    return out[:M, 0]


# ----------------------------------------------------------------------------
# Pure-JAX reference (matches the kernel's bf16-matmul numerics)
# ----------------------------------------------------------------------------

def _reference_nll(hidden, target, weight, bias, proj=None):
    h = hidden.astype(jnp.bfloat16).astype(jnp.float32)
    if proj is not None:
        p = proj.astype(jnp.bfloat16).astype(jnp.float32)
        h = (h @ p).astype(jnp.bfloat16).astype(jnp.float32)
    w = weight.astype(jnp.bfloat16).astype(jnp.float32)
    logits = h @ w.T + bias.astype(jnp.float32)
    logp = jax.nn.log_softmax(logits, axis=-1)
    return -jnp.take_along_axis(logp, target[:, None].astype(jnp.int32), axis=1)[:, 0]


# ----------------------------------------------------------------------------
# Driver
# ----------------------------------------------------------------------------

if __name__ == "__main__":
    key = jax.random.PRNGKey(0)
    ks = jax.random.split(key, 9)

    # ---- case A: d_proj == d_embed (out_projs[0] is None, module default) ----
    seq_len, bsz = 32, 8
    M = seq_len * bsz                       # hidden :: [len*bsz, d_proj]
    n_token, d_model = 300, 32

    hidden = jax.random.normal(ks[0], (M, d_model), jnp.float32)
    target = jax.random.randint(ks[1], (M,), 0, n_token, jnp.int32)
    weight = 0.02 * jax.random.normal(ks[2], (n_token, d_model), jnp.float32)
    bias = 0.02 * jax.random.normal(ks[3], (n_token,), jnp.float32)

    nll = projected_adaptive_log_softmax(hidden, target, weight, bias,
                                         tile_m=128, tile_v=128)
    nll = jax.block_until_ready(nll)
    ref = _reference_nll(hidden, target, weight, bias)
    assert nll.shape == (M,)
    assert bool(jnp.all(jnp.isfinite(nll)))
    assert bool(jnp.allclose(nll, ref, atol=2e-3, rtol=2e-3)), \
        float(jnp.max(jnp.abs(nll - ref)))

    # ---- case B: d_proj != d_embed (out_projs[0] is a projection matrix) -----
    d_proj2, d_embed2, n_token2 = 48, 32, 174
    hidden2 = jax.random.normal(ks[4], (M, d_proj2), jnp.float32)
    target2 = jax.random.randint(ks[5], (M,), 0, n_token2, jnp.int32)
    weight2 = 0.02 * jax.random.normal(ks[6], (n_token2, d_embed2), jnp.float32)
    bias2 = 0.02 * jax.random.normal(ks[7], (n_token2,), jnp.float32)
    proj2 = 0.05 * jax.random.normal(ks[8], (d_proj2, d_embed2), jnp.float32)

    nll2 = projected_adaptive_log_softmax(hidden2, target2, weight2, bias2, proj2,
                                          tile_m=128, tile_v=128)
    nll2 = jax.block_until_ready(nll2)
    ref2 = _reference_nll(hidden2, target2, weight2, bias2, proj2)
    assert nll2.shape == (M,)
    assert bool(jnp.all(jnp.isfinite(nll2)))
    assert bool(jnp.allclose(nll2, ref2, atol=2e-3, rtol=2e-3)), \
        float(jnp.max(jnp.abs(nll2 - ref2)))

    print("KERNEL_OK")
</pallas_src>

<mosaic_0001>
module attributes {stable_mosaic.version = 11 : i64} {
  func.func @_nll_kernel(%arg0: i32, %arg1: i32, %arg2: memref<128x32xbf16, #tpu.memory_space<vmem>>, %arg3: memref<128x32xbf16, #tpu.memory_space<vmem>>, %arg4: memref<1x128xf32, #tpu.memory_space<vmem>>, %arg5: memref<128x1xi32, #tpu.memory_space<vmem>>, %arg6: memref<128x1xf32, #tpu.memory_space<vmem>>, %arg7: memref<128x1xf32, #tpu.memory_space<vmem>>, %arg8: memref<128x1xf32, #tpu.memory_space<vmem>>, %arg9: memref<128x1xf32, #tpu.memory_space<vmem>>) attributes {dimension_semantics = [#tpu.dimension_semantics<parallel>, #tpu.dimension_semantics<arbitrary>], iteration_bounds = array<i64: 2, 3>, scalar_prefetch = 0 : i64, scratch_operands = 3 : i64, tpu.core_type = #tpu.core_type<tc>, window_params = [{transform_indices = @transform_0, window_bounds = array<i64: 128, 32>}, {transform_indices = @transform_1, window_bounds = array<i64: 128, 32>}, {transform_indices = @transform_2, window_bounds = array<i64: 1, 128>}, {transform_indices = @transform_3, window_bounds = array<i64: 128, 1>}, {transform_indices = @transform_4, window_bounds = array<i64: 128, 1>}]} {
    %c0 = arith.constant 0 : index
    %c0_0 = arith.constant 0 : index
    %0 = vector.load %arg2[%c0, %c0_0] : memref<128x32xbf16, #tpu.memory_space<vmem>>, vector<128x32xbf16>
    %c0_1 = arith.constant 0 : index
    %c0_2 = arith.constant 0 : index
    %1 = vector.load %arg3[%c0_1, %c0_2] : memref<128x32xbf16, #tpu.memory_space<vmem>>, vector<128x32xbf16>
    %cst = arith.constant dense<0.000000e+00> : vector<128x128xf32>
    %2 = tpu.matmul %0, %1, %cst {dimension_numbers = #tpu.dot_dimension_numbers<[1], [1], [0], [0], [0, 0, 1, 0], [], []>} : vector<128x32xbf16>, vector<128x32xbf16>, vector<128x128xf32> -> vector<128x128xf32>
    %c0_3 = arith.constant 0 : index
    %c0_4 = arith.constant 0 : index
    %3 = vector.load %arg4[%c0_3, %c0_4] : memref<1x128xf32, #tpu.memory_space<vmem>>, vector<1x128xf32>
    %4 = vector.broadcast %3 : vector<1x128xf32> to vector<128x128xf32>
    %5 = arith.addf %2, %4 : vector<128x128xf32>
    %c0_i32 = arith.constant 0 : i32
    %6 = arith.cmpi eq, %arg1, %c0_i32 : i32
    %7 = arith.extui %6 : i1 to i32
    %c0_i32_5 = arith.constant 0 : i32
    %8 = arith.cmpi ne, %7, %c0_i32_5 : i32
    scf.if %8 {
      %cst_25 = arith.constant -1.000000e+30 : f32
      %42 = vector.broadcast %cst_25 : f32 to vector<128x1xf32>
      %c0_26 = arith.constant 0 : index
      %c0_27 = arith.constant 0 : index
      %43 = vector.load %arg7[%c0_26, %c0_27] : memref<128x1xf32, #tpu.memory_space<vmem>>, vector<128x1xf32>
      tpu.vector_store %arg7[%c0_26, %c0_27], %42 {strides = array<i32>} : memref<128x1xf32, #tpu.memory_space<vmem>>, vector<128x1xf32>,
      %cst_28 = arith.constant 0.000000e+00 : f32
      %44 = vector.broadcast %cst_28 : f32 to vector<128x1xf32>
      %c0_29 = arith.constant 0 : index
      %c0_30 = arith.constant 0 : index
      %45 = vector.load %arg8[%c0_29, %c0_30] : memref<128x1xf32, #tpu.memory_space<vmem>>, vector<128x1xf32>
      tpu.vector_store %arg8[%c0_29, %c0_30], %44 {strides = array<i32>} : memref<128x1xf32, #tpu.memory_space<vmem>>, vector<128x1xf32>,
      %cst_31 = arith.constant 0.000000e+00 : f32
      %46 = vector.broadcast %cst_31 : f32 to vector<128x1xf32>
      %c0_32 = arith.constant 0 : index
      %c0_33 = arith.constant 0 : index
      %47 = vector.load %arg9[%c0_32, %c0_33] : memref<128x1xf32, #tpu.memory_space<vmem>>, vector<128x1xf32>
      tpu.vector_store %arg9[%c0_32, %c0_33], %46 {strides = array<i32>} : memref<128x1xf32, #tpu.memory_space<vmem>>, vector<128x1xf32>,
    } else {
    }
    %c128_i32 = arith.constant 128 : i32
    %9 = arith.muli %arg1, %c128_i32 : i32
    %10 = tpu.iota {dimensions = array<i32: 1>} : vector<128x128xi32>
    %11 = vector.broadcast %9 : i32 to vector<128x128xi32>
    %12 = arith.addi %11, %10 : vector<128x128xi32>
    %c0_6 = arith.constant 0 : index
    %c0_7 = arith.constant 0 : index
    %13 = vector.load %arg5[%c0_6, %c0_7] : memref<128x1xi32, #tpu.memory_space<vmem>>, vector<128x1xi32>
    %14 = vector.broadcast %13 : vector<128x1xi32> to vector<128x128xi32>
    %15 = arith.cmpi eq, %12, %14 : vector<128x128xi32>
    %c0_8 = arith.constant 0 : index
    %c0_9 = arith.constant 0 : index
    %16 = vector.load %arg9[%c0_8, %c0_9] : memref<128x1xf32, #tpu.memory_space<vmem>>, vector<128x1xf32>
    %cst_10 = arith.constant 0.000000e+00 : f32
    %17 = vector.broadcast %cst_10 : f32 to vector<128x128xf32>
    %18 = arith.select %15, %5, %17 : vector<128x128xi1>, vector<128x128xf32>
    %cst_11 = arith.constant dense<0.000000e+00> : vector<128xf32>
    %19 = vector.multi_reduction <add>, %18, %cst_11 [1] : vector<128x128xf32> to vector<128xf32>
    %20 = vector.shape_cast %19 : vector<128xf32> to vector<128x1xf32>
    %21 = arith.addf %16, %20 : vector<128x1xf32>
    %c0_12 = arith.constant 0 : index
    %c0_13 = arith.constant 0 : index
    %22 = vector.load %arg9[%c0_12, %c0_13] : memref<128x1xf32, #tpu.memory_space<vmem>>, vector<128x1xf32>
    tpu.vector_store %arg9[%c0_12, %c0_13], %21 {strides = array<i32>} : memref<128x1xf32, #tpu.memory_space<vmem>>, vector<128x1xf32>,
    %c0_14 = arith.constant 0 : index
    %c0_15 = arith.constant 0 : index
    %23 = vector.load %arg7[%c0_14, %c0_15] : memref<128x1xf32, #tpu.memory_space<vmem>>, vector<128x1xf32>
    %cst_16 = arith.constant dense<0xFF800000> : vector<128xf32>
    %24 = vector.multi_reduction <maximumf>, %5, %cst_16 [1] : vector<128x128xf32> to vector<128xf32>
    %25 = vector.shape_cast %24 : vector<128xf32> to vector<128x1xf32>
    %26 = arith.maximumf %23, %25 : vector<128x1xf32>
    %c0_17 = arith.constant 0 : index
    %c0_18 = arith.constant 0 : index
    %27 = vector.load %arg8[%c0_17, %c0_18] : memref<128x1xf32, #tpu.memory_space<vmem>>, vector<128x1xf32>
    %28 = arith.subf %23, %26 : vector<128x1xf32>
    %29 = math.exp %28 : vector<128x1xf32>
    %30 = arith.mulf %27, %29 : vector<128x1xf32>
    %31 = vector.broadcast %26 : vector<128x1xf32> to vector<128x128xf32>
    %32 = arith.subf %5, %31 : vector<128x128xf32>
    %33 = math.exp %32 : vector<128x128xf32>
    %cst_19 = arith.constant dense<0.000000e+00> : vector<128xf32>
    %34 = vector.multi_reduction <add>, %33, %cst_19 [1] : vector<128x128xf32> to vector<128xf32>
    %35 = vector.shape_cast %34 : vector<128xf32> to vector<128x1xf32>
    %36 = arith.addf %30, %35 : vector<128x1xf32>
    %c0_20 = arith.constant 0 : index
    %c0_21 = arith.constant 0 : index
    %37 = vector.load %arg8[%c0_20, %c0_21] : memref<128x1xf32, #tpu.memory_space<vmem>>, vector<128x1xf32>
    tpu.vector_store %arg8[%c0_20, %c0_21], %36 {strides = array<i32>} : memref<128x1xf32, #tpu.memory_space<vmem>>, vector<128x1xf32>,
    %c0_22 = arith.constant 0 : index
    %c0_23 = arith.constant 0 : index
    %38 = vector.load %arg7[%c0_22, %c0_23] : memref<128x1xf32, #tpu.memory_space<vmem>>, vector<128x1xf32>
    tpu.vector_store %arg7[%c0_22, %c0_23], %26 {strides = array<i32>} : memref<128x1xf32, #tpu.memory_space<vmem>>, vector<128x1xf32>,
    %c2_i32 = arith.constant 2 : i32
    %39 = arith.cmpi eq, %arg1, %c2_i32 : i32
    %40 = arith.extui %39 : i1 to i32
    %c0_i32_24 = arith.constant 0 : i32
    %41 = arith.cmpi ne, %40, %c0_i32_24 : i32
    scf.if %41 {
      %c0_25 = arith.constant 0 : index
      %c0_26 = arith.constant 0 : index
      %42 = vector.load %arg7[%c0_25, %c0_26] : memref<128x1xf32, #tpu.memory_space<vmem>>, vector<128x1xf32>
      %c0_27 = arith.constant 0 : index
      %c0_28 = arith.constant 0 : index
      %43 = vector.load %arg8[%c0_27, %c0_28] : memref<128x1xf32, #tpu.memory_space<vmem>>, vector<128x1xf32>
      %44 = math.log %43 : vector<128x1xf32>
      %45 = arith.addf %42, %44 : vector<128x1xf32>
      %c0_29 = arith.constant 0 : index
      %c0_30 = arith.constant 0 : index
      %46 = vector.load %arg9[%c0_29, %c0_30] : memref<128x1xf32, #tpu.memory_space<vmem>>, vector<128x1xf32>
      %47 = arith.subf %45, %46 : vector<128x1xf32>
      %c0_31 = arith.constant 0 : index
      %c0_32 = arith.constant 0 : index
      %48 = vector.load %arg6[%c0_31, %c0_32] : memref<128x1xf32, #tpu.memory_space<vmem>>, vector<128x1xf32>
      tpu.vector_store %arg6[%c0_31, %c0_32], %47 {strides = array<i32>} : memref<128x1xf32, #tpu.memory_space<vmem>>, vector<128x1xf32>,
    } else {
    }
    return
  }
  func.func @transform_0(%arg0: i32, %arg1: i32) -> (i32, i32) {
    %c0_i32 = arith.constant 0 : i32
    %c0_i32_0 = arith.constant 0 : i32
    return %arg0, %c0_i32 : i32, i32
  }
  func.func @transform_1(%arg0: i32, %arg1: i32) -> (i32, i32) {
    %c0_i32 = arith.constant 0 : i32
    %c0_i32_0 = arith.constant 0 : i32
    return %arg1, %c0_i32 : i32, i32
  }
  func.func @transform_2(%arg0: i32, %arg1: i32) -> (i32, i32) {
    %c0_i32 = arith.constant 0 : i32
    %c0_i32_0 = arith.constant 0 : i32
    return %c0_i32, %arg1 : i32, i32
  }
  func.func @transform_3(%arg0: i32, %arg1: i32) -> (i32, i32) {
    %c0_i32 = arith.constant 0 : i32
    %c0_i32_0 = arith.constant 0 : i32
    return %arg0, %c0_i32 : i32, i32
  }
  func.func @transform_4(%arg0: i32, %arg1: i32) -> (i32, i32) {
    %c0_i32 = arith.constant 0 : i32
    %c0_i32_0 = arith.constant 0 : i32
    return %arg0, %c0_i32 : i32, i32
  }
}

</mosaic_0001>

<bundles_post_ra>
// kernel: tpu_custom_call.1
= control target key start
LH: loop header
LB: loop body
LE: loop exit
PB: predicated region body
PF: predicated region fallthrough
CT: control target
= control target key end

     0   :  { %s1705_s15 = smov 0   ;;  %s1707_s16 = smov 0   ;;  %s2266_s0 = inlined_call_operand.vmem [shape: bf16[256,32], index: 0, kind: input, shape index: {}]   ;;  %s2267_s1 = inlined_call_operand.vmem [shape: bf16[384,32], index: 1, kind: input, shape index: {}]   ;;  %s2268_s2 = inlined_call_operand.vmem [shape: f32[1,384], index: 2, kind: input, shape index: {}]   ;;  %s2269_s3 = inlined_call_operand.vmem [shape: s32[256,1], index: 3, kind: input, shape index: {}]   ;;  %s2270_s4 = inlined_call_operand.vmem [shape: f32[256,1], index: 4, kind: output, shape index: {}]  }
   0x1   :  { %s1709_s17 = smov 0   ;;  %s1711_s18 = smov 0  }
   0x2   :  { %s1713_s19 = smov 0  }
   0x3 LB: > { %s23_s20 = sadd.s32 1, %s1667_s17  ;;  %s26_s21 = sadd.s32 1, %s1671_s18  ;;  %s1675_s19 = sphi %s1713_s19, %s14_s19   ;;  %s1671_s18 = sphi %s1711_s18, %s2311_s18   ;;  %s1667_s17 = sphi %s1709_s17, %s2310_s17   ;;  %s1663_s16 = sphi %s1707_s16, %s2309_s16   ;;  %s1659_s15 = sphi %s1705_s15, %s2308_s15  }
   0x4   : > { %p24_p0 = scmp.ge.s32.totalorder %s23_s20, 3  ;;  %p1361_p1 = scmp.ge.s32.totalorder %s1675_s19, 1 }
   0x5   : > { %p205_p2 = scmp.lt.s32.totalorder %s1675_s19, 7 }
   0x6   : > { %s2313_s20 = smov (%p24_p0, %s23_s20), 0  ;;  %s2315_s21 = smov (!%p24_p0, %s26_s21), %s1671_s18 }
   0x7   : > { %p206_p3 = pnand %p1361_p1, %p205_p2  ;;  %p28_p4 = scmp.ge.s32.totalorder %s2315_s21, 2 }
   0x9   : > { %s2317_s21 = smov (%p28_p4, %s2315_s21), 0  ;;  %209 = sbr.rel (%p206_p3) target bundleno = 823 (0x337), region = 36 }
  0x10   : > { %s1364_s22 = sshll.u32 %s1659_s15, 4  ;;  %s1362_s23 = sshll.u32 %s1663_s16, 4  ;;  %vm391_vm0 = vcmask 261120  }
  0x11   : > { %p251_p5 = scmp.lt.s32.totalorder %s1364_s22, 47  ;;  %p245_p6 = scmp.lt.s32.totalorder %s1362_s23, 31 }
  0x12   : > { %p256_p7 = scmp.lt.s32.totalorder %s1659_s15, 2  ;;  %p1395_p8 = scmp.ne.s32.totalorder %s1659_s15, 0 }
  0x13   : > { %s2319_s22 = smov (!%p251_p5, %s1364_s22), 47  ;;  %s2321_s23 = smov (!%p245_p6, %s1362_s23), 31 }
  0x14   : > { %s1365_s24 = sshll.u32 %s2319_s22, 2  ;;  %s1367_s28 = sshll.u32 %s2321_s23, 3  ;;  %vm541_vm1 = vcmask (!%p1395_p8), 7168   ;;  %v1677_v57 = vmov (!%p1395_p8), -1e+30   ;;  %v1678_v58 = vmov (!%p1395_p8), 0.0  }
  0x15   : > { %s1741_s27 = scalar_lea.vmem %s2267_s1, %s1365_s24  ;;  %s1748_s5 = scalar_lea.vmem %s2269_s3, %s1367_s28  ;;  %542 = vst.msk [vmem:[#allocation2] sm:$0xff] (!%p1395_p8), %vm541_vm1, %v1677_v57  ;;  %543 = vst.msk [vmem:[#allocation2 + $0x8] sm:$0xff] (!%p1395_p8), %vm541_vm1, %v1677_v57 }
  0x16   : > { %v1523_v0 = vld [vmem:[%s1741_s27] sm:$0xff]   ;;  %v1524_v1 = vld [vmem:[%s1741_s27 + $0x8] sm:$0xff]   ;;  %s1753_s8 = scalar_lea.vmem %s2270_s4, %s1367_s28  ;;  %s1363_s9 = sshll.u32 %s2321_s23, 2  ;;  %v1525_v3 = vld [vmem:[%s1741_s27 + $0x10] sm:$0xff]   ;;  %544 = vst.msk [vmem:[#allocation2 + $0x10] sm:$0xff] (!%p1395_p8), %vm541_vm1, %v1677_v57 }
  0x17   : > { %1464 = vmatprep.subr.msk.bf16.mxu0 %vm391_vm0, %v1523_v0  ;;  %1465 = vmatprep.subr.msk.bf16.mxu1 %vm391_vm0, %v1523_v0  ;;  %v417_v2 = vsel %vm391_vm0, %v1523_v0, 0  ;;  %s1763_s12 = scalar_lea.vmem %s2266_s0, %s1363_s9  ;;  %v420_v4 = vsel %vm391_vm0, %v1524_v1, 0  ;;  %v423_v7 = vsel %vm391_vm0, %v1525_v3, 0  ;;  %v1526_v8 = vld [vmem:[%s1741_s27 + $0x18] sm:$0xff]   ;;  %v1527_v10 = vld [vmem:[%s1741_s27 + $0x20] sm:$0xff]   ;;  %v1528_v12 = vld [vmem:[%s1741_s27 + $0x28] sm:$0xff]  }
  0x18   : > { %1417 = vmatpush3.bf16.xpose.msra.mxu0 %v417_v2  ;;  %1456 = vmatpush3.bf16.xpose.msra.mxu1 %v417_v2  ;;  %v1531_v5 = vld [vmem:[%s1763_s12] sm:$0xff]   ;;  %v426_v9 = vsel %vm391_vm0, %v1526_v8, 0  ;;  %v429_v11 = vsel %vm391_vm0, %v1527_v10, 0  ;;  %v432_v13 = vsel %vm391_vm0, %v1528_v12, 0  ;;  %v1529_v14 = vld [vmem:[%s1741_s27 + $0x30] sm:$0xff]   ;;  %v1530_v16 = vld [vmem:[%s1741_s27 + $0x38] sm:$0xff]  }
  0x19   : > { %1466 = vmatprep.subr.msk.bf16.mxu0 %vm391_vm0, %v1524_v1  ;;  %1467 = vmatprep.subr.msk.bf16.mxu1 %vm391_vm0, %v1524_v1  ;;  %v1532_v6 = vld [vmem:[%s1763_s12 + $0x20] sm:$0xff]   ;;  %v435_v15 = vsel %vm391_vm0, %v1529_v14, 0  ;;  %v438_v17 = vsel %vm391_vm0, %v1530_v16, 0  ;;  %v1533_v18 = vld [vmem:[%s1763_s12 + $0x8] sm:$0xff]   ;;  %v1535_v20 = vld [vmem:[%s1763_s12 + $0x10] sm:$0xff]   ;;  %s257_s13 = scalar_select %p256_p7, %s1659_s15, 2 }
  0x1a   : > { %1432 = vmatprep.mubr.msk.bf16.mxu0 %vm391_vm0, %v1531_v5  ;;  %1440 = vmatprep.mubr.msk.bf16.mxu1 %vm391_vm0, %v1532_v6  ;;  %v1534_v19 = vld [vmem:[%s1763_s12 + $0x28] sm:$0xff]   ;;  %v1536_v21 = vld [vmem:[%s1763_s12 + $0x30] sm:$0xff]   ;;  %v1537_v22 = vld [vmem:[%s1763_s12 + $0x18] sm:$0xff]   ;;  %545 = vst.msk [vmem:[#allocation2 + $0x18] sm:$0xff] (!%p1395_p8), %vm541_vm1, %v1677_v57 }
  0x1b   : > { %v1538_v23 = vld [vmem:[%s1763_s12 + $0x38] sm:$0xff]   ;;  %s258_s22 = scalar_lea.vmem %s2268_s2, %s257_s13  ;;  %546 = vst.msk [vmem:[#allocation2 + $0x20] sm:$0xff] (!%p1395_p8), %vm541_vm1, %v1677_v57  ;;  %547 = vst.msk [vmem:[#allocation2 + $0x28] sm:$0xff] (!%p1395_p8), %vm541_vm1, %v1677_v57 }
  0x1c   : > { %v1370_v24 = vld [vmem:[%s258_s22] ss:$0 sm:$0xff]  ;;  %548 = vst.msk [vmem:[#allocation2 + $0x30] sm:$0xff] (!%p1395_p8), %vm541_vm1, %v1677_v57  ;;  %549 = vst.msk [vmem:[#allocation2 + $0x38] sm:$0xff] (!%p1395_p8), %vm541_vm1, %v1677_v57 }
  0x1d   : > { %550 = vst.msk [vmem:[#allocation2 + $0x40] sm:$0xff] (!%p1395_p8), %vm541_vm1, %v1677_v57  ;;  %551 = vst.msk [vmem:[#allocation2 + $0x48] sm:$0xff] (!%p1395_p8), %vm541_vm1, %v1677_v57 }
  0x1e   : > { %552 = vst.msk [vmem:[#allocation2 + $0x50] sm:$0xff] (!%p1395_p8), %vm541_vm1, %v1677_v57  ;;  %553 = vst.msk [vmem:[#allocation2 + $0x58] sm:$0xff] (!%p1395_p8), %vm541_vm1, %v1677_v57 }
  0x1f   : > { %554 = vst.msk [vmem:[#allocation2 + $0x60] sm:$0xff] (!%p1395_p8), %vm541_vm1, %v1677_v57  ;;  %555 = vst.msk [vmem:[#allocation2 + $0x68] sm:$0xff] (!%p1395_p8), %vm541_vm1, %v1677_v57 }
  0x20   : > { %1419 = vmatpush3.bf16.xpose.msra.mxu0 %v420_v4  ;;  %1457 = vmatpush3.bf16.xpose.msra.mxu1 %v420_v4  ;;  %556 = vst.msk [vmem:[#allocation2 + $0x70] sm:$0xff] (!%p1395_p8), %vm541_vm1, %v1677_v57  ;;  %557 = vst.msk [vmem:[#allocation2 + $0x78] sm:$0xff] (!%p1395_p8), %vm541_vm1, %v1677_v57 }
  0x21   : > { %1468 = vmatprep.subr.msk.bf16.mxu0 %vm391_vm0, %v1525_v3  ;;  %1469 = vmatprep.subr.msk.bf16.mxu1 %vm391_vm0, %v1525_v3  ;;  %558 = vst.msk [vmem:[#allocation3] sm:$0xff] (!%p1395_p8), %vm541_vm1, %v1678_v58  ;;  %559 = vst.msk [vmem:[#allocation3 + $0x8] sm:$0xff] (!%p1395_p8), %vm541_vm1, %v1678_v58 }
  0x22   : > { %560 = vst.msk [vmem:[#allocation3 + $0x10] sm:$0xff] (!%p1395_p8), %vm541_vm1, %v1678_v58  ;;  %561 = vst.msk [vmem:[#allocation3 + $0x18] sm:$0xff] (!%p1395_p8), %vm541_vm1, %v1678_v58 }
  0x23   : > { %562 = vst.msk [vmem:[#allocation3 + $0x20] sm:$0xff] (!%p1395_p8), %vm541_vm1, %v1678_v58  ;;  %563 = vst.msk [vmem:[#allocation3 + $0x28] sm:$0xff] (!%p1395_p8), %vm541_vm1, %v1678_v58 }
  0x24   : > { %564 = vst.msk [vmem:[#allocation3 + $0x30] sm:$0xff] (!%p1395_p8), %vm541_vm1, %v1678_v58  ;;  %565 = vst.msk [vmem:[#allocation3 + $0x38] sm:$0xff] (!%p1395_p8), %vm541_vm1, %v1678_v58 }
  0x25   : > { %566 = vst.msk [vmem:[#allocation3 + $0x40] sm:$0xff] (!%p1395_p8), %vm541_vm1, %v1678_v58  ;;  %567 = vst.msk [vmem:[#allocation3 + $0x48] sm:$0xff] (!%p1395_p8), %vm541_vm1, %v1678_v58 }
  0x26   : > { %568 = vst.msk [vmem:[#allocation3 + $0x50] sm:$0xff] (!%p1395_p8), %vm541_vm1, %v1678_v58  ;;  %569 = vst.msk [vmem:[#allocation3 + $0x58] sm:$0xff] (!%p1395_p8), %vm541_vm1, %v1678_v58 }
  0x27   : > { %570 = vst.msk [vmem:[#allocation3 + $0x60] sm:$0xff] (!%p1395_p8), %vm541_vm1, %v1678_v58  ;;  %571 = vst.msk [vmem:[#allocation3 + $0x68] sm:$0xff] (!%p1395_p8), %vm541_vm1, %v1678_v58 }
  0x28   : > { %1421 = vmatpush3.bf16.xpose.msra.mxu0 %v423_v7  ;;  %1458 = vmatpush3.bf16.xpose.msra.mxu1 %v423_v7  ;;  %572 = vst.msk [vmem:[#allocation3 + $0x70] sm:$0xff] (!%p1395_p8), %vm541_vm1, %v1678_v58  ;;  %573 = vst.msk [vmem:[#allocation3 + $0x78] sm:$0xff] (!%p1395_p8), %vm541_vm1, %v1678_v58 }
  0x29   : > { %1470 = vmatprep.subr.msk.bf16.mxu0 %vm391_vm0, %v1526_v8  ;;  %1471 = vmatprep.subr.msk.bf16.mxu1 %vm391_vm0, %v1526_v8  ;;  %574 = vst.msk [vmem:[#allocation4] sm:$0xff] (!%p1395_p8), %vm541_vm1, %v1678_v58  ;;  %575 = vst.msk [vmem:[#allocation4 + $0x8] sm:$0xff] (!%p1395_p8), %vm541_vm1, %v1678_v58 }
  0x2a   : > { %576 = vst.msk [vmem:[#allocation4 + $0x10] sm:$0xff] (!%p1395_p8), %vm541_vm1, %v1678_v58  ;;  %577 = vst.msk [vmem:[#allocation4 + $0x18] sm:$0xff] (!%p1395_p8), %vm541_vm1, %v1678_v58 }
  0x2b   : > { %578 = vst.msk [vmem:[#allocation4 + $0x20] sm:$0xff] (!%p1395_p8), %vm541_vm1, %v1678_v58  ;;  %579 = vst.msk [vmem:[#allocation4 + $0x28] sm:$0xff] (!%p1395_p8), %vm541_vm1, %v1678_v58 }
  0x2c   : > { %580 = vst.msk [vmem:[#allocation4 + $0x30] sm:$0xff] (!%p1395_p8), %vm541_vm1, %v1678_v58  ;;  %581 = vst.msk [vmem:[#allocation4 + $0x38] sm:$0xff] (!%p1395_p8), %vm541_vm1, %v1678_v58 }
  0x2d   : > { %582 = vst.msk [vmem:[#allocation4 + $0x40] sm:$0xff] (!%p1395_p8), %vm541_vm1, %v1678_v58  ;;  %583 = vst.msk [vmem:[#allocation4 + $0x48] sm:$0xff] (!%p1395_p8), %vm541_vm1, %v1678_v58 }
  0x2e   : > { %584 = vst.msk [vmem:[#allocation4 + $0x50] sm:$0xff] (!%p1395_p8), %vm541_vm1, %v1678_v58  ;;  %585 = vst.msk [vmem:[#allocation4 + $0x58] sm:$0xff] (!%p1395_p8), %vm541_vm1, %v1678_v58 }
  0x2f   : > { %586 = vst.msk [vmem:[#allocation4 + $0x60] sm:$0xff] (!%p1395_p8), %vm541_vm1, %v1678_v58  ;;  %587 = vst.msk [vmem:[#allocation4 + $0x68] sm:$0xff] (!%p1395_p8), %vm541_vm1, %v1678_v58 }
  0x30   : > { %1423 = vmatpush3.bf16.xpose.msra.mxu0 %v426_v9  ;;  %1459 = vmatpush3.bf16.xpose.msra.mxu1 %v426_v9  ;;  %588 = vst.msk [vmem:[#allocation4 + $0x70] sm:$0xff] (!%p1395_p8), %vm541_vm1, %v1678_v58  ;;  %589 = vst.msk [vmem:[#allocation4 + $0x78] sm:$0xff] (!%p1395_p8), %vm541_vm1, %v1678_v58 }
  0x31   : > { %1472 = vmatprep.subr.msk.bf16.mxu0 %vm391_vm0, %v1527_v10  ;;  %1473 = vmatprep.subr.msk.bf16.mxu1 %vm391_vm0, %v1527_v10 }
  0x38   : > { %1425 = vmatpush3.bf16.xpose.msra.mxu0 %v429_v11  ;;  %1460 = vmatpush3.bf16.xpose.msra.mxu1 %v429_v11 }
  0x39   : > { %1474 = vmatprep.subr.msk.bf16.mxu0 %vm391_vm0, %v1528_v12  ;;  %1475 = vmatprep.subr.msk.bf16.mxu1 %vm391_vm0, %v1528_v12 }
  0x40   : > { %1427 = vmatpush3.bf16.xpose.msra.mxu0 %v432_v13  ;;  %1461 = vmatpush3.bf16.xpose.msra.mxu1 %v432_v13 }
  0x41   : > { %1476 = vmatprep.subr.msk.bf16.mxu0 %vm391_vm0, %v1529_v14  ;;  %1477 = vmatprep.subr.msk.bf16.mxu1 %vm391_vm0, %v1529_v14 }
  0x48   : > { %1429 = vmatpush3.bf16.xpose.msra.mxu0 %v435_v15  ;;  %1462 = vmatpush3.bf16.xpose.msra.mxu1 %v435_v15 }
  0x49   : > { %1478 = vmatprep.subr.msk.bf16.mxu0 %vm391_vm0, %v1530_v16  ;;  %1479 = vmatprep.subr.msk.bf16.mxu1 %vm391_vm0, %v1530_v16 }
  0x50   : > { %1431 = vmatpush3.bf16.xpose.msra.mxu0 %v438_v17  ;;  %1463 = vmatpush3.bf16.xpose.msra.mxu1 %v438_v17 }
  0x57   : > { %1433 = vmatmul.mubr.msk.bf16.vlgmr.msra.gmra.mrb[0].mxu0 %vm391_vm0, %v1533_v18  ;;  %1441 = vmatmul.mubr.msk.bf16.vlgmr.msra.gmra.mrb[0].mxu1 %vm391_vm0, %v1534_v19 }
  0x58   : > { %1436 = vmatprep.mubr.msk.bf16.mxu0 %vm391_vm0, %v1535_v20  ;;  %1444 = vmatprep.mubr.msk.bf16.mxu1 %vm391_vm0, %v1536_v21 }
  0x5f   : > { %1437 = vmatmul.mubr.msk.bf16.gmra.mrb[4].mxu0 %vm391_vm0, %v1537_v22  ;;  %1445 = vmatmul.mubr.msk.bf16.gmra.mrb[4].mxu1 %vm391_vm0, %v1538_v23 }
 0x12a   : > { %v1434_v25 = vpop.f32.mrb[0].mxu0  ;;  %v1442_v26 = vpop.f32.mrb[0].mxu1 }
 0x12b   : > { %v1811_v27 = vadd.f32 %v1434_v25, %v1370_v24  ;;  %v1813_v28 = vadd.f32 %v1442_v26, %v1370_v24  ;;  %v474_v29 = vpop.f32.mrb[1].mxu0  ;;  %v506_v30 = vpop.f32.mrb[1].mxu1 }
 0x12c   : > { %v1815_v31 = vadd.f32 %v1370_v24, %v474_v29  ;;  %v1817_v32 = vadd.f32 %v1370_v24, %v506_v30  ;;  %v1435_v33 = vpop.f32.mrb[2].mxu0  ;;  %v1443_v34 = vpop.f32.mrb[2].mxu1 }
 0x12d   : > { %v1819_v35 = vadd.f32 %v1435_v33, %v1370_v24  ;;  %v1821_v36 = vadd.f32 %v1443_v34, %v1370_v24  ;;  %v477_v37 = vpop.f32.mrb[3].mxu0  ;;  %v509_v38 = vpop.f32.mrb[3].mxu1 }
 0x12e   : > { %v1823_v39 = vadd.f32 %v1370_v24, %v477_v37  ;;  %v1825_v40 = vadd.f32 %v1370_v24, %v509_v38 }
 0x130   : > { %540 = sbr.rel (%p1395_p8) target bundleno = 311 (0x137), region = 40 }
 0x132   : > { %v1438_v41 = vpop.f32.mrb[4].mxu0  ;;  %v1446_v42 = vpop.f32.mrb[4].mxu1 }
 0x133   : > { %v1827_v43 = vadd.f32 %v1438_v41, %v1370_v24  ;;  %v1829_v44 = vadd.f32 %v1446_v42, %v1370_v24  ;;  %v490_v45 = vpop.f32.mrb[5].mxu0  ;;  %v522_v46 = vpop.f32.mrb[5].mxu1 }
 0x134   : > { %v1831_v47 = vadd.f32 %v1370_v24, %v490_v45  ;;  %v1833_v48 = vadd.f32 %v1370_v24, %v522_v46  ;;  %v1439_v49 = vpop.f32.mrb[6].mxu0  ;;  %v1447_v50 = vpop.f32.mrb[6].mxu1 }
 0x135   : > { %v1835_v51 = vadd.f32 %v1439_v49, %v1370_v24  ;;  %v1837_v52 = vadd.f32 %v1447_v50, %v1370_v24  ;;  %v493_v53 = vpop.f32.mrb[7].mxu0  ;;  %v525_v54 = vpop.f32.mrb[7].mxu1 }
 0x136   : > { %v1839_v55 = vadd.f32 %v1370_v24, %v493_v53  ;;  %v1841_v56 = vadd.f32 %v1370_v24, %v525_v54 }
 0x137 PF: > { %790 = vmax.xlane.f32.xlu0 %v1823_v39  ;;  %788 = vmax.xlane.f32.xlu1 %v1815_v31  ;;  %v1679_v59 = vmov 0   ;;  %v597_v60 = vld [vmem:[%s1748_s5 + $0x10] sm:$0xff]  ;;  %v598_v61 = vld [vmem:[%s1748_s5 + $0x18] sm:$0xff]  ;;  %v595_v62 = vld [vmem:[%s1748_s5] sm:$0xff]  ;;  %vm755_vm2 = vcmask 7168   ;;  %s1396_s23 = sshll.u32 %s1659_s15, 7 }
 0x138   : > { %1539 = vset.pattern.permute.xlu0 %v1679_v59  ;;  %1540 = vset.pattern.permute.xlu1 %v1679_v59  ;;  %v600_v63 = vld [vmem:[%s1748_s5 + $0x28] sm:$0xff]  ;;  %v602_v1 = vld [vmem:[%s1748_s5 + $0x38] sm:$0xff]  ;;  %v599_v2 = vld [vmem:[%s1748_s5 + $0x20] sm:$0xff]  ;;  %v593_v58 = vstv %s1396_s23  ;;  %p1397_p9 = scmp.ne.s32.totalorder %s1659_s15, 2 }
 0x139   : > { %v596_v0 = vld [vmem:[%s1748_s5 + $0x8] sm:$0xff]  ;;  %v601_v4 = vld [vmem:[%s1748_s5 + $0x30] sm:$0xff]  ;;  %v607_v5 = vld [vmem:[%s1748_s5 + $0x60] sm:$0xff] }
 0x13a   : > { %v604_v3 = vld [vmem:[%s1748_s5 + $0x48] sm:$0xff]  ;;  %v603_v6 = vld [vmem:[%s1748_s5 + $0x40] sm:$0xff]  ;;  %v605_v7 = vld [vmem:[%s1748_s5 + $0x50] sm:$0xff] }
 0x13b   : > { %792 = vmax.xlane.f32.xlu0 %v1811_v27  ;;  %794 = vmax.xlane.f32.xlu1 %v1819_v35  ;;  %v606_v8 = vld [vmem:[%s1748_s5 + $0x58] sm:$0xff]  ;;  %v1921_v9 = vld [vmem:[#allocation2 + $0x8] sm:$0xff]  ;;  %v1923_v10 = vld [vmem:[#allocation2] sm:$0xff] }
 0x13c   : > { %v1931_v15 = vld [vmem:[#allocation2 + $0x10] sm:$0xff]  ;;  %v1933_v16 = vld [vmem:[#allocation2 + $0x18] sm:$0xff]  ;;  %v1951_v23 = vld [vmem:[#allocation2 + $0x20] sm:$0xff] }
 0x13d   : > { %v1953_v24 = vld [vmem:[#allocation2 + $0x28] sm:$0xff]  ;;  %v1971_v37 = vld [vmem:[#allocation2 + $0x30] sm:$0xff]  ;;  %v1973_v38 = vld [vmem:[#allocation2 + $0x38] sm:$0xff] }
 0x13e   : > { %v1991_v53 = vld [vmem:[#allocation2 + $0x40] sm:$0xff]  ;;  %v1993_v54 = vld [vmem:[#allocation2 + $0x48] sm:$0xff] }
 0x13f   : > { %796 = vmax.xlane.f32.xlu0 %v1831_v47  ;;  %798 = vmax.xlane.f32.xlu1 %v1839_v55 }
 0x143   : > { %800 = vmax.xlane.f32.xlu0 %v1827_v43  ;;  %802 = vmax.xlane.f32.xlu1 %v1835_v51 }
 0x147   : > { %804 = vmax.xlane.f32.xlu0 %v1817_v32  ;;  %806 = vmax.xlane.f32.xlu1 %v1825_v40 }
 0x14b   : > { %808 = vmax.xlane.f32.xlu0 %v1813_v28  ;;  %810 = vmax.xlane.f32.xlu1 %v1821_v36 }
 0x14f   : > { %812 = vmax.xlane.f32.xlu0 %v1833_v48  ;;  %814 = vmax.xlane.f32.xlu1 %v1841_v56 }
 0x153   : > { %816 = vmax.xlane.f32.xlu0 %v1829_v44  ;;  %818 = vmax.xlane.f32.xlu1 %v1837_v52 }
 0x164   : > { %618 = vperm.xlu1 %1540, %v597_v60  }
 0x168   : > { %621 = vperm.xlu1 %1540, %v598_v61  }
 0x169   : > { %612 = vperm.xlu0 %1539, %v595_v62  }
 0x16c   : > { %627 = vperm.xlu1 %1540, %v600_v63   ;;  %v2011_v63 = vld [vmem:[#allocation2 + $0x50] sm:$0xff] }
 0x16d   : > { %615 = vperm.xlu0 %1539, %v596_v0   ;;  %v2013_v0 = vld [vmem:[#allocation2 + $0x58] sm:$0xff] }
 0x170   : > { %633 = vperm.xlu1 %1540, %v602_v1  }
 0x171   : > { %624 = vperm.xlu0 %1539, %v599_v2  }
 0x174   : > { %639 = vperm.xlu1 %1540, %v604_v3  }
 0x175   : > { %630 = vperm.xlu0 %1539, %v601_v4  }
 0x178   : > { %648 = vperm.xlu1 %1540, %v607_v5  }
 0x179   : > { %636 = vperm.xlu0 %1539, %v603_v6  }
 0x17d   : > { %642 = vperm.xlu0 %1539, %v605_v7   ;;  %v2031_v7 = vld [vmem:[#allocation2 + $0x60] sm:$0xff] }
 0x181   : > { %645 = vperm.xlu0 %1539, %v606_v8   ;;  %v2033_v8 = vld [vmem:[#allocation2 + $0x68] sm:$0xff] }
 0x182   : > { %2279 = vst [vmem:[#allocation6_spill] sm:$0xff] %v2033_v8 }
 0x1c4   : > { %v791_v11 = vpop.xlane.xlu0 %790  ;;  %v789_v12 = vpop.xlane.xlu1 %788 }
 0x1c5   : > { %v1926_v13 = vmax.f32 %v1921_v9, %v791_v11  ;;  %v1929_v14 = vmax.f32 %v1923_v10, %v789_v12 }
 0x1c7   : > { %1109 = vst.msk [vmem:[#allocation2 + $0x8] sm:$0xff] %vm755_vm2, %v1926_v13  ;;  %1108 = vst.msk [vmem:[#allocation2] sm:$0xff] %vm755_vm2, %v1929_v14  ;;  %918 = vperm.xlu1 %1540, %v1929_v14   ;;  %923 = vperm.xlu0 %1539, %v1926_v13  }
 0x1c8   : > { %v793_v19 = vpop.xlane.xlu0 %792  ;;  %v795_v20 = vpop.xlane.xlu1 %794 }
 0x1c9   : > { %v1946_v21 = vmax.f32 %v1931_v15, %v793_v19  ;;  %v1949_v22 = vmax.f32 %v1933_v16, %v795_v20 }
 0x1cb   : > { %1110 = vst.msk [vmem:[#allocation2 + $0x10] sm:$0xff] %vm755_vm2, %v1946_v21  ;;  %1111 = vst.msk [vmem:[#allocation2 + $0x18] sm:$0xff] %vm755_vm2, %v1949_v22  ;;  %928 = vperm.xlu1 %1540, %v1946_v21   ;;  %933 = vperm.xlu0 %1539, %v1949_v22  }
 0x1cc   : > { %v797_v29 = vpop.xlane.xlu0 %796  ;;  %v799_v30 = vpop.xlane.xlu1 %798 }
 0x1cd   : > { %v1966_v33 = vmax.f32 %v1951_v23, %v797_v29  ;;  %v1969_v34 = vmax.f32 %v1953_v24, %v799_v30 }
 0x1cf   : > { %1112 = vst.msk [vmem:[#allocation2 + $0x20] sm:$0xff] %vm755_vm2, %v1966_v33  ;;  %1113 = vst.msk [vmem:[#allocation2 + $0x28] sm:$0xff] %vm755_vm2, %v1969_v34  ;;  %938 = vperm.xlu1 %1540, %v1966_v33   ;;  %943 = vperm.xlu0 %1539, %v1969_v34  }
 0x1d0   : > { %v801_v45 = vpop.xlane.xlu0 %800  ;;  %v803_v46 = vpop.xlane.xlu1 %802 }
 0x1d1   : > { %v1986_v49 = vmax.f32 %v1971_v37, %v801_v45  ;;  %v1989_v50 = vmax.f32 %v1973_v38, %v803_v46  ;;  %v2051_v45 = vld [vmem:[#allocation2 + $0x70] sm:$0xff]  ;;  %v2053_v46 = vld [vmem:[#allocation2 + $0x78] sm:$0xff] }
 0x1d2   : > { %2281 = vst [vmem:[#allocation8_spill] sm:$0xff] %v2051_v45  ;;  %2282 = vst [vmem:[#allocation9_spill] sm:$0xff] %v2053_v46 }
 0x1d3   : > { %1114 = vst.msk [vmem:[#allocation2 + $0x30] sm:$0xff] %vm755_vm2, %v1986_v49  ;;  %1115 = vst.msk [vmem:[#allocation2 + $0x38] sm:$0xff] %vm755_vm2, %v1989_v50  ;;  %948 = vperm.xlu1 %1540, %v1986_v49   ;;  %953 = vperm.xlu0 %1539, %v1989_v50  }
 0x1d4   : > { %v805_v59 = vpop.xlane.xlu0 %804  ;;  %v807_v60 = vpop.xlane.xlu1 %806 }
 0x1d5   : > { %v2006_v61 = vmax.f32 %v1991_v53, %v805_v59  ;;  %v2009_v62 = vmax.f32 %v1993_v54, %v807_v60  ;;  %v591_v60 = vlaneseq }
 0x1d7   : > { %1116 = vst.msk [vmem:[#allocation2 + $0x40] sm:$0xff] %vm755_vm2, %v2006_v61  ;;  %1117 = vst.msk [vmem:[#allocation2 + $0x48] sm:$0xff] %vm755_vm2, %v2009_v62  ;;  %958 = vperm.xlu1 %1540, %v2006_v61   ;;  %963 = vperm.xlu0 %1539, %v2009_v62   ;;  %v592_v11 = vand.u32 127, %v591_v60 }
 0x1d8   : > { %v809_v3 = vpop.xlane.xlu0 %808  ;;  %v811_v4 = vpop.xlane.xlu1 %810 }
 0x1d9   : > { %v2026_v5 = vmax.f32 %v2011_v63, %v809_v3  ;;  %v2029_v6 = vmax.f32 %v2013_v0, %v811_v4  ;;  %v609_v4 = vld [vmem:[%s1748_s5 + $0x70] sm:$0xff] }
 0x1db   : > { %2278 = vst [vmem:[#allocation5_spill] sm:$0xff] %v2029_v6  ;;  %1118 = vst.msk [vmem:[#allocation2 + $0x50] sm:$0xff] %vm755_vm2, %v2026_v5  ;;  %968 = vperm.xlu1 %1540, %v2026_v5   ;;  %973 = vperm.xlu0 %1539, %v2029_v6  }
 0x1dc   : > { %1119 = vst.msk [vmem:[#allocation2 + $0x58] sm:$0xff] %vm755_vm2, %v2029_v6  ;;  %v813_v19 = vpop.xlane.xlu0 %812  ;;  %v815_v20 = vpop.xlane.xlu1 %814 }
 0x1dd   : > { %v2046_v29 = vmax.f32 %v2031_v7, %v813_v19  ;;  %v2049_v30 = vmax.f32 %v2033_v8, %v815_v20 }
 0x1df   : > { %2280 = vst [vmem:[#allocation7_spill] sm:$0xff] %v2049_v30  ;;  %1120 = vst.msk [vmem:[#allocation2 + $0x60] sm:$0xff] %vm755_vm2, %v2046_v29  ;;  %978 = vperm.xlu1 %1540, %v2046_v29   ;;  %983 = vperm.xlu0 %1539, %v2049_v30  }
 0x1e0   : > { %1121 = vst.msk [vmem:[#allocation2 + $0x68] sm:$0xff] %vm755_vm2, %v2049_v30  ;;  %v817_v3 = vpop.xlane.xlu0 %816  ;;  %v819_v19 = vpop.xlane.xlu1 %818 }
 0x1e1   : > { %v2067_v20 = vmax.f32 %v2051_v45, %v817_v3  ;;  %v2070_v12 = vmax.f32 %v2053_v46, %v819_v19  ;;  %v608_v3 = vld [vmem:[%s1748_s5 + $0x68] sm:$0xff]  ;;  %v610_v19 = vld [vmem:[%s1748_s5 + $0x78] sm:$0xff] }
 0x1e3   : > { %2283 = vst [vmem:[#allocation10_spill] sm:$0xff] %v2067_v20  ;;  %2284 = vst [vmem:[#allocation11_spill] sm:$0xff] %v2070_v12  ;;  %988 = vperm.xlu1 %1540, %v2067_v20   ;;  %654 = vperm.xlu0 %1539, %v609_v4   ;;  %v2085_v4 = vadd.s32 %v593_v58, %v592_v11 }
 0x1e4   : > { %1122 = vst.msk [vmem:[#allocation2 + $0x70] sm:$0xff] %vm755_vm2, %v2067_v20  ;;  %1123 = vst.msk [vmem:[#allocation2 + $0x78] sm:$0xff] %vm755_vm2, %v2070_v12  ;;  %v619_v42 = vpop.permute.xlu1 %618 }
 0x1e5   : > { %vm661_vm4 = vcmp.eq.s32.totalorder %v2085_v4, %v619_v42 }
 0x1e7   : > { %651 = vperm.xlu1 %1540, %v608_v3   ;;  %993 = vperm.xlu0 %1539, %v2070_v12  }
 0x1e8   : > { %v613_v2 = vpop.permute.xlu0 %612  ;;  %v622_v59 = vpop.permute.xlu1 %621 }
 0x1e9   : > { %vm659_vm3 = vcmp.eq.s32.totalorder %v2085_v4, %v613_v2  ;;  %vm662_vm5 = vcmp.eq.s32.totalorder %v2085_v4, %v622_v59 }
 0x1ea   : > { %v691_v26 = vsel %vm659_vm3, %v1815_v31, 0.0  ;;  %v694_v58 = vsel %vm662_vm5, %v1819_v35, 0.0 }
 0x1eb   : > { %657 = vperm.xlu1 %1540, %v610_v19   ;;  %v693_v19 = vsel %vm661_vm4, %v1811_v27, 0.0 }
 0x1ec   : > { %v616_v1 = vpop.permute.xlu0 %615  ;;  %v628_v41 = vpop.permute.xlu1 %627 }
 0x1ed   : > { %vm660_vm6 = vcmp.eq.s32.totalorder %v2085_v4, %v616_v1  ;;  %vm664_vm7 = vcmp.eq.s32.totalorder %v2085_v4, %v628_v41 }
 0x1ee   : > { %v692_v2 = vsel %vm660_vm6, %v1823_v39, 0.0 }
 0x1f0   : > { %v625_v57 = vpop.permute.xlu0 %624  ;;  %v634_v42 = vpop.permute.xlu1 %633 }
 0x1f1   : > { %vm663_vm8 = vcmp.eq.s32.totalorder %v2085_v4, %v625_v57  ;;  %vm666_vm9 = vcmp.eq.s32.totalorder %v2085_v4, %v634_v42 }
 0x1f2   : > { %v695_v60 = vsel %vm663_vm8, %v1831_v47, 0.0 }
 0x1f4   : > { %v631_v3 = vpop.permute.xlu0 %630  ;;  %v640_v59 = vpop.permute.xlu1 %639 }
 0x1f5   : > { %vm665_vm10 = vcmp.eq.s32.totalorder %v2085_v4, %v631_v3  ;;  %vm668_vm11 = vcmp.eq.s32.totalorder %v2085_v4, %v640_v59 }
 0x1f6   : > { %v697_v41 = vsel %vm665_vm10, %v1827_v43, 0.0 }
 0x1f8   : > { %v637_v11 = vpop.permute.xlu0 %636  ;;  %v649_v3 = vpop.permute.xlu1 %648 }
 0x1f9   : > { %vm667_vm12 = vcmp.eq.s32.totalorder %v2085_v4, %v637_v11  ;;  %vm671_vm15 = vcmp.eq.s32.totalorder %v2085_v4, %v649_v3 }
 0x1fa   : > { %v703_v11 = vsel %vm671_vm15, %v1833_v48, 0.0 }
 0x1fc   : > { %v643_v1 = vpop.permute.xlu0 %642 }
 0x1fd   : > { %vm669_vm14 = vcmp.eq.s32.totalorder %v2085_v4, %v643_v1 }
 0x200   : > { %v646_v57 = vpop.permute.xlu0 %645 }
 0x201   : > { %vm670_vm13 = vcmp.eq.s32.totalorder %v2085_v4, %v646_v57 }
 0x202   : > { %v702_v42 = vsel %vm670_vm13, %v1821_v36, 0.0 }
 0x206   : > { %707 = vadd.xlane.f32.xlu0 %v691_v26  ;;  %v696_v26 = vsel %vm664_vm7, %v1839_v55, 0.0 }
 0x20a   : > { %711 = vadd.xlane.f32.xlu0 %v693_v19  ;;  %v698_v19 = vsel %vm666_vm9, %v1835_v51, 0.0 }
 0x20e   : > { %713 = vadd.xlane.f32.xlu0 %v694_v58  ;;  %v700_v58 = vsel %vm668_vm11, %v1825_v40, 0.0 }
 0x20f   : > { %709 = vadd.xlane.f32.xlu1 %v692_v2  ;;  %v699_v2 = vsel %vm667_vm12, %v1817_v32, 0.0 }
 0x212   : > { %717 = vadd.xlane.f32.xlu0 %v696_v26  ;;  %v701_v26 = vsel %vm669_vm14, %v1813_v28, 0.0 }
 0x213   : > { %715 = vadd.xlane.f32.xlu1 %v695_v60 }
 0x216   : > { %721 = vadd.xlane.f32.xlu0 %v698_v19 }
 0x217   : > { %719 = vadd.xlane.f32.xlu1 %v697_v41 }
 0x21a   : > { %725 = vadd.xlane.f32.xlu0 %v700_v58 }
 0x21b   : > { %723 = vadd.xlane.f32.xlu1 %v699_v2 }
 0x21e   : > { %729 = vadd.xlane.f32.xlu0 %v702_v42 }
 0x21f   : > { %727 = vadd.xlane.f32.xlu1 %v701_v26 }
 0x223   : > { %731 = vadd.xlane.f32.xlu1 %v703_v11 }
 0x246   : > { %v919_v60 = vpop.permute.xlu1 %918  ;;  %v924_v59 = vpop.permute.xlu0 %923 }
 0x247   : > { %v996_v2 = vsub.f32 %v1815_v31, %v919_v60  ;;  %v997_v46 = vsub.f32 %v1823_v39, %v924_v59 }
 0x249   : > { %v1012_v12 = vmul.f32 1.442695, %v996_v2  ;;  %v1014_v45 = vmul.f32 1.442695, %v997_v46 }
 0x24a   : > { %v929_v19 = vpop.permute.xlu1 %928  ;;  %v934_v41 = vpop.permute.xlu0 %933 }
 0x24b   : > { %v998_v3 = vsub.f32 %v1811_v27, %v929_v19  ;;  %1541 = vpow2.f32 %v1012_v12  ;;  %v999_v6 = vsub.f32 %v1819_v35, %v934_v41 }
 0x24d   : > { %v1016_v11 = vmul.f32 1.442695, %v998_v3  ;;  %v1018_v12 = vmul.f32 1.442695, %v999_v6 }
 0x24e   : > { %v939_v57 = vpop.permute.xlu1 %938  ;;  %v944_v1 = vpop.permute.xlu0 %943 }
 0x24f   : > { %v1000_v30 = vsub.f32 %v1831_v47, %v939_v57  ;;  %1543 = vpow2.f32 %v1016_v11  ;;  %v1001_v47 = vsub.f32 %v1839_v55, %v944_v1 }
 0x250   : > { %1545 = vpow2.f32 %v1014_v45 }
 0x251   : > { %v1020_v31 = vmul.f32 1.442695, %v1000_v30 }
 0x252   : > { %v949_v17 = vpop.permute.xlu1 %948  ;;  %v954_v58 = vpop.permute.xlu0 %953 }
 0x253   : > { %v1002_v60 = vsub.f32 %v1827_v43, %v949_v17  ;;  %1547 = vpow2.f32 %v1020_v31  ;;  %v1022_v17 = vmul.f32 1.442695, %v1001_v47  ;;  %v1003_v19 = vsub.f32 %v1835_v51, %v954_v58 }
 0x254   : > { %1549 = vpow2.f32 %v1018_v12 }
 0x255   : > { %v1024_v59 = vmul.f32 1.442695, %v1002_v60  ;;  %v1542_v30 = vpop.eup %1541  ;;  %v1026_v41 = vmul.f32 1.442695, %v1003_v19 }
 0x256   : > { %v959_v25 = vpop.permute.xlu1 %958  ;;  %v964_v18 = vpop.permute.xlu0 %963 }
 0x257   : > { %v1004_v46 = vsub.f32 %v1817_v32, %v959_v25  ;;  %1551 = vpow2.f32 %v1024_v59  ;;  %v1005_v57 = vsub.f32 %v1825_v40, %v964_v18 }
 0x258   : > { %1553 = vpow2.f32 %v1022_v17  ;;  %v677_v17 = vld [vmem:[#allocation4 + $0x10] sm:$0xff] }
 0x259   : > { %v1028_v6 = vmul.f32 1.442695, %v1004_v46  ;;  %v1544_v32 = vpop.eup %1543 }
 0x25a   : > { %v969_v42 = vpop.permute.xlu1 %968  ;;  %v974_v26 = vpop.permute.xlu0 %973 }
 0x25b   : > { %v1006_v55 = vsub.f32 %v1813_v28, %v969_v42  ;;  %1555 = vpow2.f32 %v1028_v6  ;;  %v1546_v58 = vpop.eup %1545  ;;  %v1030_v28 = vmul.f32 1.442695, %v1005_v57  ;;  %v1007_v42 = vsub.f32 %v1821_v36, %v974_v26 }
 0x25c   : > { %1557 = vpow2.f32 %v1026_v41 }
 0x25d   : > { %v1032_v51 = vmul.f32 1.442695, %v1006_v55  ;;  %v1548_v3 = vpop.eup %1547  ;;  %v1034_v18 = vmul.f32 1.442695, %v1007_v42  ;;  %v678_v55 = vld [vmem:[#allocation4 + $0x18] sm:$0xff] }
 0x25e   : > { %v979_v8 = vpop.permute.xlu1 %978  ;;  %v2117_v20 = vpop.permute.xlu0 %983 }
 0x25f   : > { %v1008_v1 = vsub.f32 %v1833_v48, %v979_v8  ;;  %1559 = vpow2.f32 %v1032_v51  ;;  %v1550_v31 = vpop.eup %1549  ;;  %v1009_v48 = vsub.f32 %v1841_v56, %v2117_v20  ;;  %v680_v51 = vld [vmem:[#allocation4 + $0x28] sm:$0xff] }
 0x260   : > { %1561 = vpow2.f32 %v1030_v28 }
 0x261   : > { %v1552_v40 = vpop.eup %1551  ;;  %v1038_v26 = vmul.f32 1.442695, %v1009_v48 }
 0x262   : > { %v989_v2 = vpop.permute.xlu1 %988  ;;  %v655_v27 = vpop.permute.xlu0 %654 }
 0x263   : > { %vm673_vm0 = vcmp.eq.s32.totalorder %v2085_v4, %v655_v27  ;;  %v1010_v11 = vsub.f32 %v1829_v44, %v989_v2  ;;  %v1554_v60 = vpop.eup %1553 }
 0x264   : > { %v705_v39 = vsel %vm673_vm0, %v1829_v44, 0.0 }
 0x265   : > { %735 = vadd.xlane.f32.xlu1 %v705_v39  ;;  %v1040_v8 = vmul.f32 1.442695, %v1010_v11  ;;  %v1556_v36 = vpop.eup %1555  ;;  %v681_v11 = vld [vmem:[#allocation4 + $0x30] sm:$0xff] }
 0x266   : > { %v652_v35 = vpop.permute.xlu1 %651  ;;  %v994_v27 = vpop.permute.xlu0 %993 }
 0x267   : > { %vm672_vm1 = vcmp.eq.s32.totalorder %v2085_v4, %v652_v35  ;;  %v1011_v44 = vsub.f32 %v1837_v52, %v994_v27  ;;  %v1558_v2 = vpop.eup %1557 }
 0x268   : > { %v704_v43 = vsel %vm672_vm1, %v1841_v56, 0.0 }
 0x269   : > { %1044 = vadd.xlane.f32.xlu1 %v1542_v30  ;;  %733 = vadd.xlane.f32.xlu0 %v704_v43  ;;  %v1560_v39 = vpop.eup %1559  ;;  %v1042_v12 = vmul.f32 1.442695, %v1011_v44 }
 0x26a   : > { %v658_v45 = vpop.permute.xlu1 %657  ;;  %v1562_v47 = vpop.eup %1561 }
 0x26b   : > { %vm674_vm3 = vcmp.eq.s32.totalorder %v2085_v4, %v658_v45  ;;  %v1036_v4 = vmul.f32 1.442695, %v1008_v1  ;;  %v676_v45 = vld [vmem:[#allocation4 + $0x8] sm:$0xff]  ;;  %v679_v1 = vld [vmem:[#allocation4 + $0x20] sm:$0xff] }
 0x26c   : > { %v706_v25 = vsel %vm674_vm3, %v1837_v52, 0.0  ;;  %v675_v52 = vld [vmem:[#allocation4] sm:$0xff] }
 0x26d   : > { %1048 = vadd.xlane.f32.xlu1 %v1544_v32  ;;  %737 = vadd.xlane.f32.xlu0 %v706_v25  ;;  %1563 = vpow2.f32 %v1036_v4  ;;  %v682_v4 = vld [vmem:[#allocation4 + $0x38] sm:$0xff] }
 0x26e   : > { %1565 = vpow2.f32 %v1034_v18 }
 0x26f   : > { %1567 = vpow2.f32 %v1040_v8  ;;  %v684_v8 = vld [vmem:[#allocation4 + $0x48] sm:$0xff] }
 0x270   : > { %1569 = vpow2.f32 %v1038_v26 }
 0x271   : > { %1052 = vadd.xlane.f32.xlu1 %v1548_v3  ;;  %1046 = vadd.xlane.f32.xlu0 %v1546_v58  ;;  %1571 = vpow2.f32 %v1042_v12 }
 0x275   : > { %1056 = vadd.xlane.f32.xlu1 %v1552_v40  ;;  %1050 = vadd.xlane.f32.xlu0 %v1550_v31 }
 0x277   : > { %v1564_v59 = vpop.eup %1563 }
 0x278   : > { %v1566_v56 = vpop.eup %1565 }
 0x279   : > { %1060 = vadd.xlane.f32.xlu1 %v1556_v36  ;;  %1054 = vadd.xlane.f32.xlu0 %v1554_v60  ;;  %v1568_v20 = vpop.eup %1567  ;;  %v683_v60 = vld [vmem:[#allocation4 + $0x40] sm:$0xff] }
 0x27a   : > { %v1570_v46 = vpop.eup %1569 }
 0x27b   : > { %v1572_v35 = vpop.eup %1571 }
 0x27d   : > { %1064 = vadd.xlane.f32.xlu1 %v1560_v39  ;;  %1058 = vadd.xlane.f32.xlu0 %v1558_v2  ;;  %v686_v2 = vld [vmem:[#allocation4 + $0x58] sm:$0xff]  ;;  %v685_v39 = vld [vmem:[#allocation4 + $0x50] sm:$0xff] }
 0x281   : > { %1068 = vadd.xlane.f32.xlu1 %v1564_v59  ;;  %1062 = vadd.xlane.f32.xlu0 %v1562_v47 }
 0x285   : > { %1072 = vadd.xlane.f32.xlu1 %v1568_v20  ;;  %1066 = vadd.xlane.f32.xlu0 %v1566_v56  ;;  %v687_v20 = vld [vmem:[#allocation4 + $0x60] sm:$0xff] }
 0x289   : > { %1070 = vadd.xlane.f32.xlu0 %v1570_v46 }
 0x28d   : > { %1074 = vadd.xlane.f32.xlu0 %v1572_v35 }
 0x293   : > { %v708_v30 = vpop.xlane.xlu0 %707 }
 0x294   : > { %v739_v43 = vadd.f32 %v708_v30, %v675_v52  ;;  %v2285_v52 = vsub.f32 %v1923_v10, %v1929_v14  ;;  %v2290_v14 = vsub.f32 %v1971_v37, %v1986_v49 }
 0x296   : > { %756 = vst.msk [vmem:[#allocation4] sm:$0xff] %vm755_vm2, %v739_v43  ;;  %v868_v30 = vmul.f32 1.442695, %v2285_v52  ;;  %v2286_v43 = vsub.f32 %v1931_v15, %v1946_v21  ;;  %v880_v15 = vmul.f32 1.442695, %v2290_v14  ;;  %v689_v21 = vld [vmem:[#allocation4 + $0x70] sm:$0xff] }
 0x297   : > { %v712_v19 = vpop.xlane.xlu0 %711  ;;  %v2302_v14 = vld [vmem:[#allocation6_spill] sm:$0xff] }
 0x298   : > { %v741_v6 = vadd.f32 %v712_v19, %v677_v17  ;;  %1573 = vpow2.f32 %v868_v30  ;;  %v872_v17 = vmul.f32 1.442695, %v2286_v43  ;;  %v2287_v19 = vsub.f32 %v1921_v9, %v1926_v13  ;;  %v836_v9 = vld [vmem:[#allocation3] sm:$0xff] }
 0x299   : > { %v2291_v13 = vsub.f32 %v1953_v24, %v1969_v34 }
 0x29a   : > { %758 = vst.msk [vmem:[#allocation4 + $0x10] sm:$0xff] %vm755_vm2, %v741_v6  ;;  %v870_v6 = vmul.f32 1.442695, %v2287_v19  ;;  %1575 = vpow2.f32 %v872_v17 }
 0x29b   : > { %v714_v32 = vpop.xlane.xlu0 %713 }
 0x29c   : > { %v710_v25 = vpop.xlane.xlu1 %709  ;;  %v742_v41 = vadd.f32 %v714_v32, %v678_v55  ;;  %v2288_v55 = vsub.f32 %v1951_v23, %v1966_v33  ;;  %1577 = vpow2.f32 %v870_v6  ;;  %v2289_v32 = vsub.f32 %v1933_v16, %v1949_v22 }
 0x29d   : > { %v740_v57 = vadd.f32 %v710_v25, %v676_v45  ;;  %v878_v23 = vmul.f32 1.442695, %v2291_v13  ;;  %v2292_v16 = vsub.f32 %v1991_v53, %v2006_v61  ;;  %v2294_v53 = vsub.f32 %v2011_v63, %v2026_v5 }
 0x29e   : > { %759 = vst.msk [vmem:[#allocation4 + $0x18] sm:$0xff] %vm755_vm2, %v742_v41  ;;  %v876_v45 = vmul.f32 1.442695, %v2288_v55  ;;  %v874_v10 = vmul.f32 1.442695, %v2289_v32  ;;  %v2296_v5 = vsub.f32 %v2031_v7, %v2046_v29  ;;  %v2299_v29 = vld [vmem:[#allocation8_spill] sm:$0xff] }
 0x29f   : > { %757 = vst.msk [vmem:[#allocation4 + $0x8] sm:$0xff] %vm755_vm2, %v740_v57  ;;  %v718_v58 = vpop.xlane.xlu0 %717  ;;  %v884_v22 = vmul.f32 1.442695, %v2292_v16  ;;  %v688_v57 = vld [vmem:[#allocation4 + $0x68] sm:$0xff]  ;;  %v888_v61 = vmul.f32 1.442695, %v2294_v53 }
 0x2a0   : > { %v716_v3 = vpop.xlane.xlu1 %715  ;;  %v744_v28 = vadd.f32 %v718_v58, %v680_v51  ;;  %1579 = vpow2.f32 %v876_v45  ;;  %v838_v58 = vld [vmem:[#allocation3 + $0x10] sm:$0xff]  ;;  %v844_v45 = vld [vmem:[#allocation3 + $0x40] sm:$0xff] }
 0x2a1   : > { %v743_v42 = vadd.f32 %v716_v3, %v679_v1  ;;  %1581 = vpow2.f32 %v874_v10  ;;  %v2293_v3 = vsub.f32 %v1973_v38, %v1989_v50  ;;  %v837_v38 = vld [vmem:[#allocation3 + $0x8] sm:$0xff]  ;;  %v2295_v50 = vsub.f32 %v1993_v54, %v2009_v62  ;;  %v839_v54 = vld [vmem:[#allocation3 + $0x18] sm:$0xff]  ;;  %v2297_v62 = vld [vmem:[#allocation5_spill] sm:$0xff] }
 0x2a2   : > { %761 = vst.msk [vmem:[#allocation4 + $0x28] sm:$0xff] %vm755_vm2, %v744_v28  ;;  %v1574_v25 = vpop.eup %1573  ;;  %1583 = vpow2.f32 %v880_v15  ;;  %v2303_v15 = vld [vmem:[#allocation7_spill] sm:$0xff] }
 0x2a3   : > { %760 = vst.msk [vmem:[#allocation4 + $0x20] sm:$0xff] %vm755_vm2, %v743_v42  ;;  %v722_v31 = vpop.xlane.xlu0 %721  ;;  %v900_v37 = vmul.f32 %v1574_v25, %v836_v9  ;;  %1585 = vpow2.f32 %v878_v23  ;;  %v882_v24 = vmul.f32 1.442695, %v2293_v3  ;;  %v690_v42 = vld [vmem:[#allocation4 + $0x78] sm:$0xff] }
 0x2a4   : > { %v720_v40 = vpop.xlane.xlu1 %719  ;;  %v746_v18 = vadd.f32 %v722_v31, %v682_v4  ;;  %v1576_v49 = vpop.eup %1575  ;;  %1587 = vpow2.f32 %v884_v22  ;;  %v846_v22 = vld [vmem:[#allocation3 + $0x50] sm:$0xff] }
 0x2a5   : > { %v745_v48 = vadd.f32 %v720_v40, %v681_v11  ;;  %v902_v11 = vmul.f32 %v1576_v49, %v838_v58  ;;  %1589 = vpow2.f32 %v882_v24 }
 0x2a6   : > { %763 = vst.msk [vmem:[#allocation4 + $0x38] sm:$0xff] %vm755_vm2, %v746_v18  ;;  %v1578_v4 = vpop.eup %1577  ;;  %1591 = vpow2.f32 %v888_v61 }
 0x2a7   : > { %762 = vst.msk [vmem:[#allocation4 + $0x30] sm:$0xff] %vm755_vm2, %v745_v48  ;;  %v726_v27 = vpop.xlane.xlu0 %725  ;;  %v840_v48 = vld [vmem:[#allocation3 + $0x20] sm:$0xff] }
 0x2a8   : > { %v724_v36 = vpop.xlane.xlu1 %723  ;;  %v748_v26 = vadd.f32 %v726_v27, %v684_v8  ;;  %v886_v8 = vmul.f32 1.442695, %v2295_v50  ;;  %v892_v27 = vmul.f32 1.442695, %v2296_v5  ;;  %v847_v5 = vld [vmem:[#allocation3 + $0x58] sm:$0xff] }
 0x2a9   : > { %v747_v44 = vadd.f32 %v724_v36, %v683_v60 }
 0x2aa   : > { %765 = vst.msk [vmem:[#allocation4 + $0x48] sm:$0xff] %vm755_vm2, %v748_v26  ;;  %v1580_v31 = vpop.eup %1579  ;;  %1593 = vpow2.f32 %v886_v8 }
 0x2ab   : > { %764 = vst.msk [vmem:[#allocation4 + $0x40] sm:$0xff] %vm755_vm2, %v747_v44  ;;  %v730_v12 = vpop.xlane.xlu0 %729  ;;  %v1582_v36 = vpop.eup %1581  ;;  %v904_v26 = vmul.f32 %v1580_v31, %v840_v48  ;;  %v901_v44 = vmul.f32 %v1578_v4, %v837_v38  ;;  %1595 = vpow2.f32 %v892_v27  ;;  %v848_v4 = vld [vmem:[#allocation3 + $0x60] sm:$0xff] }
 0x2ac   : > { %v728_v47 = vpop.xlane.xlu1 %727  ;;  %v750_v59 = vadd.f32 %v730_v12, %v686_v2  ;;  %v1584_v2 = vpop.eup %1583  ;;  %v903_v17 = vmul.f32 %v1582_v36, %v839_v54 }
 0x2ad   : > { %v749_v56 = vadd.f32 %v728_v47, %v685_v39  ;;  %v842_v47 = vld [vmem:[#allocation3 + $0x30] sm:$0xff]  ;;  %v1586_v30 = vpop.eup %1585 }
 0x2ae   : > { %767 = vst.msk [vmem:[#allocation4 + $0x58] sm:$0xff] %vm755_vm2, %v750_v59  ;;  %v2298_v59 = vsub.f32 %v2013_v0, %v2297_v62  ;;  %v906_v43 = vmul.f32 %v1584_v2, %v842_v47  ;;  %v1588_v19 = vpop.eup %1587  ;;  %v841_v0 = vld [vmem:[#allocation3 + $0x28] sm:$0xff] }
 0x2af   : > { %766 = vst.msk [vmem:[#allocation4 + $0x50] sm:$0xff] %vm755_vm2, %v749_v56  ;;  %v908_v9 = vmul.f32 %v1588_v19, %v844_v45  ;;  %v905_v13 = vmul.f32 %v1586_v30, %v841_v0  ;;  %v849_v47 = vld [vmem:[#allocation3 + $0x68] sm:$0xff] }
 0x2b0   : > { %v732_v46 = vpop.xlane.xlu1 %731  ;;  %v890_v56 = vmul.f32 1.442695, %v2298_v59 }
 0x2b1   : > { %v751_v35 = vadd.f32 %v732_v46, %v687_v20  ;;  %v2300_v46 = vld [vmem:[#allocation10_spill] sm:$0xff] }
 0x2b2   : > { %1597 = vpow2.f32 %v890_v56 }
 0x2b3   : > { %768 = vst.msk [vmem:[#allocation4 + $0x60] sm:$0xff] %vm755_vm2, %v751_v35  ;;  %v2301_v35 = vsub.f32 %v2299_v29, %v2300_v46 }
 0x2b5   : > { %v896_v52 = vmul.f32 1.442695, %v2301_v35 }
 0x2b7   : > { %1599 = vpow2.f32 %v896_v52 }
 0x2f2   : > { %v736_v41 = vpop.xlane.xlu1 %735 }
 0x2f3   : > { %v753_v33 = vadd.f32 %v736_v41, %v689_v21  ;;  %v2304_v21 = vsub.f32 %v2302_v14, %v2303_v15  ;;  %v1590_v41 = vpop.eup %1589 }
 0x2f4   : > { %v1592_v23 = vpop.eup %1591 }
 0x2f5   : > { %770 = vst.msk [vmem:[#allocation4 + $0x70] sm:$0xff] %vm755_vm2, %v753_v33  ;;  %v894_v25 = vmul.f32 1.442695, %v2304_v21  ;;  %v1594_v24 = vpop.eup %1593  ;;  %v1128_v21 = vld [vmem:[#allocation2] sm:$0xff] (!%p1397_p9) }
 0x2f6   : > { %v1045_v51 = vpop.xlane.xlu1 %1044  ;;  %v734_v1 = vpop.xlane.xlu0 %733 }
 0x2f7   : > { %v1076_v34 = vadd.f32 %v1045_v51, %v900_v37  ;;  %v752_v28 = vadd.f32 %v734_v1, %v688_v57  ;;  %v843_v57 = vld [vmem:[#allocation3 + $0x38] sm:$0xff]  ;;  %1601 = vpow2.f32 %v894_v25  ;;  %v2305_v51 = vld [vmem:[#allocation9_spill] sm:$0xff]  ;;  %v2306_v1 = vld [vmem:[#allocation11_spill] sm:$0xff]  ;;  %v1596_v53 = vpop.eup %1595 }
 0x2f8   : > { %v2307_v58 = vsub.f32 %v2305_v51, %v2306_v1  ;;  %v912_v48 = vmul.f32 %v1596_v53, %v848_v4  ;;  %v1209_v1 = vld [vmem:[#allocation4 + $0x8] sm:$0xff] (!%p1397_p9)  ;;  %v1210_v53 = vld [vmem:[#allocation4 + $0x10] sm:$0xff] (!%p1397_p9) }
 0x2f9   : > { %1092 = vst.msk [vmem:[#allocation3] sm:$0xff] %vm755_vm2, %v1076_v34  ;;  %769 = vst.msk [vmem:[#allocation4 + $0x68] sm:$0xff] %vm755_vm2, %v752_v28  ;;  %v910_v34 = vmul.f32 %v1592_v23, %v846_v22  ;;  %v907_v28 = vmul.f32 %v1590_v41, %v843_v57  ;;  %v1130_v57 = vld [vmem:[#allocation2 + $0x10] sm:$0xff] (!%p1397_p9) }
 0x2fa   : > { %v1049_v40 = vpop.xlane.xlu1 %1048  ;;  %v738_v18 = vpop.xlane.xlu0 %737  ;;  %v898_v3 = vmul.f32 1.442695, %v2307_v58 }
 0x2fb   : > { %v1078_v60 = vadd.f32 %v1049_v40, %v902_v11  ;;  %v754_v63 = vadd.f32 %v738_v18, %v690_v42  ;;  %v845_v11 = vld [vmem:[#allocation3 + $0x48] sm:$0xff]  ;;  %v1598_v18 = vpop.eup %1597 }
 0x2fc   : > { %1603 = vpow2.f32 %v898_v3  ;;  %v909_v38 = vmul.f32 %v1594_v24, %v845_v11  ;;  %v1600_v50 = vpop.eup %1599  ;;  %v1131_v3 = vld [vmem:[#allocation2 + $0x18] sm:$0xff] (!%p1397_p9) }
 0x2fd   : > { %1094 = vst.msk [vmem:[#allocation3 + $0x10] sm:$0xff] %vm755_vm2, %v1078_v60  ;;  %771 = vst.msk [vmem:[#allocation4 + $0x78] sm:$0xff] %vm755_vm2, %v754_v63  ;;  %v850_v63 = vld [vmem:[#allocation3 + $0x70] sm:$0xff] }
 0x2fe   : > { %v1053_v39 = vpop.xlane.xlu1 %1052  ;;  %v1047_v12 = vpop.xlane.xlu0 %1046 }
 0x2ff   : > { %v1080_v20 = vadd.f32 %v1053_v39, %v904_v26  ;;  %v1077_v7 = vadd.f32 %v1047_v12, %v901_v44  ;;  %v914_v26 = vmul.f32 %v1600_v50, %v850_v63  ;;  %v911_v44 = vmul.f32 %v1598_v18, %v847_v5  ;;  %v1211_v18 = vld [vmem:[#allocation4 + $0x18] sm:$0xff] (!%p1397_p9)  ;;  %v1212_v63 = vld [vmem:[#allocation4 + $0x20] sm:$0xff] (!%p1397_p9) }
 0x300   : > { %v1144_v30 = vld [vmem:[#allocation3] sm:$0xff] (!%p1397_p9) }
 0x301   : > { %1096 = vst.msk [vmem:[#allocation3 + $0x20] sm:$0xff] %vm755_vm2, %v1080_v20  ;;  %1093 = vst.msk [vmem:[#allocation3 + $0x8] sm:$0xff] %vm755_vm2, %v1077_v7  ;;  %v1602_v2 = vpop.eup %1601  ;;  %v851_v7 = vld [vmem:[#allocation3 + $0x78] sm:$0xff]  ;;  %1605 = vlog2.f32 (!%p1397_p9), %v1144_v30  ;;  %v1137_v30 = vld [vmem:[#allocation2 + $0x48] sm:$0xff] (!%p1397_p9) }
 0x302   : > { %v1057_v6 = vpop.xlane.xlu1 %1056  ;;  %v1051_v55 = vpop.xlane.xlu0 %1050  ;;  %v913_v59 = vmul.f32 %v1602_v2, %v849_v47  ;;  %v1213_v2 = vld [vmem:[#allocation4 + $0x28] sm:$0xff] (!%p1397_p9) }
 0x303   : > { %v1082_v32 = vadd.f32 %v1057_v6, %v906_v43  ;;  %v1079_v10 = vadd.f32 %v1051_v55, %v903_v17 }
 0x304   : > { %v1146_v17 = vld [vmem:[#allocation3 + $0x10] sm:$0xff] (!%p1397_p9) }
 0x305   : > { %1098 = vst.msk [vmem:[#allocation3 + $0x30] sm:$0xff] %vm755_vm2, %v1082_v32  ;;  %1095 = vst.msk [vmem:[#allocation3 + $0x18] sm:$0xff] %vm755_vm2, %v1079_v10 }
 0x306   : > { %v1061_v33 = vpop.xlane.xlu1 %1060  ;;  %v1055_v16 = vpop.xlane.xlu0 %1054 }
 0x307   : > { %v1084_v37 = vadd.f32 %v1061_v33, %v908_v9  ;;  %v1081_v49 = vadd.f32 %v1055_v16, %v905_v13  ;;  %v1604_v56 = vpop.eup %1603  ;;  %v1129_v13 = vld [vmem:[#allocation2 + $0x8] sm:$0xff] (!%p1397_p9)  ;;  %v1208_v16 = vld [vmem:[#allocation4] sm:$0xff] (!%p1397_p9) }
 0x308   : > { %v915_v46 = vmul.f32 %v1604_v56, %v851_v7  ;;  %v1145_v43 = vld [vmem:[#allocation3 + $0x8] sm:$0xff] (!%p1397_p9)  ;;  %v1148_v6 = vld [vmem:[#allocation3 + $0x20] sm:$0xff] (!%p1397_p9) }
 0x309   : > { %1100 = vst.msk [vmem:[#allocation3 + $0x40] sm:$0xff] %vm755_vm2, %v1084_v37  ;;  %1097 = vst.msk [vmem:[#allocation3 + $0x28] sm:$0xff] %vm755_vm2, %v1081_v49  ;;  %1607 = vlog2.f32 (!%p1397_p9), %v1145_v43 }
 0x30a   : > { %v1065_v61 = vpop.xlane.xlu1 %1064  ;;  %v1059_v42 = vpop.xlane.xlu0 %1058  ;;  %1609 = vlog2.f32 (!%p1397_p9), %v1146_v17 }
 0x30b   : > { %v1086_v31 = vadd.f32 %v1065_v61, %v910_v34  ;;  %v1083_v40 = vadd.f32 %v1059_v42, %v907_v28  ;;  %v1606_v15 = vpop.eup (!%p1397_p9), %1605  ;;  %v1132_v42 = vld [vmem:[#allocation2 + $0x20] sm:$0xff] (!%p1397_p9) }
 0x30c   : > { %v1147_v19 = vld [vmem:[#allocation3 + $0x18] sm:$0xff] (!%p1397_p9)  ;;  %v1150_v45 = vld [vmem:[#allocation3 + $0x30] sm:$0xff] (!%p1397_p9)  ;;  %v1161_v9 = vmul.f32 (!%p1397_p9), 0.6931472, %v1606_v15 }
 0x30d   : > { %1102 = vst.msk [vmem:[#allocation3 + $0x50] sm:$0xff] %vm755_vm2, %v1086_v31  ;;  %1099 = vst.msk [vmem:[#allocation3 + $0x38] sm:$0xff] %vm755_vm2, %v1083_v40  ;;  %1611 = vlog2.f32 (!%p1397_p9), %v1147_v19 }
 0x30e   : > { %v1069_v8 = vpop.xlane.xlu1 %1068  ;;  %v1063_v60 = vpop.xlane.xlu0 %1062  ;;  %1613 = vlog2.f32 (!%p1397_p9), %v1148_v6  ;;  %v1192_v51 = vadd.f32 (!%p1397_p9), %v1161_v9, %v1128_v21  ;;  %v1216_v6 = vld [vmem:[#allocation4 + $0x40] sm:$0xff] (!%p1397_p9)  ;;  %v1139_v21 = vld [vmem:[#allocation2 + $0x58] sm:$0xff] (!%p1397_p9) }
 0x30f   : > { %v1088_v27 = vadd.f32 %v1069_v8, %v912_v48  ;;  %v1085_v36 = vadd.f32 %v1063_v60, %v909_v38  ;;  %v1133_v38 = vld [vmem:[#allocation2 + $0x28] sm:$0xff] (!%p1397_p9) }
 0x310   : > { %v1149_v55 = vld [vmem:[#allocation3 + $0x28] sm:$0xff] (!%p1397_p9)  ;;  %v1152_v32 = vld [vmem:[#allocation3 + $0x40] sm:$0xff] (!%p1397_p9)  ;;  %v1224_v31 = vsub.f32 (!%p1397_p9), %v1192_v51, %v1208_v16 }
 0x311   : > { %1104 = vst.msk [vmem:[#allocation3 + $0x60] sm:$0xff] %vm755_vm2, %v1088_v27  ;;  %1101 = vst.msk [vmem:[#allocation3 + $0x48] sm:$0xff] %vm755_vm2, %v1085_v36  ;;  %1615 = vlog2.f32 (!%p1397_p9), %v1149_v55  ;;  %v1134_v27 = vld [vmem:[#allocation2 + $0x30] sm:$0xff] (!%p1397_p9)  ;;  %v1141_v51 = vld [vmem:[#allocation2 + $0x68] sm:$0xff] (!%p1397_p9) }
 0x312   : > { %v1073_v39 = vpop.xlane.xlu1 %1072  ;;  %v1067_v12 = vpop.xlane.xlu0 %1066  ;;  %1617 = vlog2.f32 (!%p1397_p9), %v1150_v45  ;;  %1240 = vst.msk [vmem:[%s1753_s8] sm:$0xff] (!%p1397_p9), %vm755_vm2, %v1224_v31  ;;  %v1138_v45 = vld [vmem:[#allocation2 + $0x50] sm:$0xff] (!%p1397_p9)  ;;  %v1143_v31 = vld [vmem:[#allocation2 + $0x78] sm:$0xff] (!%p1397_p9) }
 0x313   : > { %v1090_v54 = vadd.f32 %v1073_v39, %v914_v26  ;;  %v1087_v62 = vadd.f32 %v1067_v12, %v911_v44  ;;  %v1608_v41 = vpop.eup (!%p1397_p9), %1607  ;;  %v1135_v12 = vld [vmem:[#allocation2 + $0x38] sm:$0xff] (!%p1397_p9) }
 0x314   : > { %v1151_v0 = vld [vmem:[#allocation3 + $0x38] sm:$0xff] (!%p1397_p9)  ;;  %v1154_v14 = vld [vmem:[#allocation3 + $0x50] sm:$0xff] (!%p1397_p9)  ;;  %v1610_v33 = vpop.eup (!%p1397_p9), %1609  ;;  %v1163_v22 = vmul.f32 (!%p1397_p9), 0.6931472, %v1608_v41 }
 0x315   : > { %1106 = vst.msk [vmem:[#allocation3 + $0x70] sm:$0xff] %vm755_vm2, %v1090_v54  ;;  %1103 = vst.msk [vmem:[#allocation3 + $0x58] sm:$0xff] %vm755_vm2, %v1087_v62  ;;  %1619 = vlog2.f32 (!%p1397_p9), %v1151_v0  ;;  %v1165_v58 = vmul.f32 (!%p1397_p9), 0.6931472, %v1610_v33  ;;  %v1140_v33 = vld [vmem:[#allocation2 + $0x60] sm:$0xff] (!%p1397_p9) }
 0x316   : > { %v1071_v20 = vpop.xlane.xlu0 %1070  ;;  %1621 = vlog2.f32 (!%p1397_p9), %v1152_v32  ;;  %v1193_v28 = vadd.f32 (!%p1397_p9), %v1163_v22, %v1129_v13  ;;  %v1218_v13 = vld [vmem:[#allocation4 + $0x50] sm:$0xff] (!%p1397_p9) }
 0x317   : > { %v1089_v29 = vadd.f32 %v1071_v20, %v913_v59  ;;  %1127 = sbr.rel (%p1397_p9) target bundleno = 823 (0x337), region = 44  ;;  %v1612_v49 = vpop.eup (!%p1397_p9), %1611  ;;  %v1194_v40 = vadd.f32 (!%p1397_p9), %v1165_v58, %v1130_v57  ;;  %v1214_v59 = vld [vmem:[#allocation4 + $0x30] sm:$0xff] (!%p1397_p9)  ;;  %v1136_v20 = vld [vmem:[#allocation2 + $0x40] sm:$0xff] (!%p1397_p9) }
 0x318   : > { %v1153_v10 = vld [vmem:[#allocation3 + $0x48] sm:$0xff] (!%p1397_p9)  ;;  %v1156_v23 = vld [vmem:[#allocation3 + $0x60] sm:$0xff] (!%p1397_p9)  ;;  %v1614_v34 = vpop.eup (!%p1397_p9), %1613  ;;  %v1167_v61 = vmul.f32 (!%p1397_p9), 0.6931472, %v1612_v49  ;;  %v1225_v8 = vsub.f32 (!%p1397_p9), %v1193_v28, %v1209_v1  ;;  %v1142_v28 = vld [vmem:[#allocation2 + $0x70] sm:$0xff] (!%p1397_p9) }
 0x319   : > { %1105 = vst.msk [vmem:[#allocation3 + $0x68] sm:$0xff] %vm755_vm2, %v1089_v29  ;;  %1623 = vlog2.f32 (!%p1397_p9), %v1153_v10  ;;  %v1169_v48 = vmul.f32 (!%p1397_p9), 0.6931472, %v1614_v34  ;;  %v1226_v26 = vsub.f32 (!%p1397_p9), %v1194_v40, %v1210_v53 }
 0x31a   : > { %v1075_v35 = vpop.xlane.xlu0 %1074  ;;  %1625 = vlog2.f32 (!%p1397_p9), %v1154_v14  ;;  %v1195_v60 = vadd.f32 (!%p1397_p9), %v1167_v61, %v1131_v3  ;;  %1241 = vst.msk [vmem:[%s1753_s8 + $0x8] sm:$0xff] (!%p1397_p9), %vm755_vm2, %v1225_v8  ;;  %v1217_v14 = vld [vmem:[#allocation4 + $0x48] sm:$0xff] (!%p1397_p9) }
 0x31b   : > { %v1091_v52 = vadd.f32 %v1075_v35, %v915_v46  ;;  %v1616_v11 = vpop.eup (!%p1397_p9), %1615  ;;  %v1196_v44 = vadd.f32 (!%p1397_p9), %v1169_v48, %v1132_v42  ;;  %1242 = vst.msk [vmem:[%s1753_s8 + $0x10] sm:$0xff] (!%p1397_p9), %vm755_vm2, %v1226_v26  ;;  %v1215_v35 = vld [vmem:[#allocation4 + $0x38] sm:$0xff] (!%p1397_p9)  ;;  %v1222_v48 = vld [vmem:[#allocation4 + $0x70] sm:$0xff] (!%p1397_p9) }
 0x31c   : > { %v1155_v25 = vld [vmem:[#allocation3 + $0x58] sm:$0xff] (!%p1397_p9)  ;;  %v1158_v24 = vld [vmem:[#allocation3 + $0x70] sm:$0xff] (!%p1397_p9)  ;;  %v1618_v50 = vpop.eup (!%p1397_p9), %1617  ;;  %v1171_v5 = vmul.f32 (!%p1397_p9), 0.6931472, %v1616_v11  ;;  %v1227_v54 = vsub.f32 (!%p1397_p9), %v1195_v60, %v1211_v18 }
 0x31d   : > { %1107 = vst.msk [vmem:[#allocation3 + $0x78] sm:$0xff] %vm755_vm2, %v1091_v52  ;;  %1627 = vlog2.f32 (!%p1397_p9), %v1155_v25  ;;  %v1173_v39 = vmul.f32 (!%p1397_p9), 0.6931472, %v1618_v50  ;;  %v1228_v29 = vsub.f32 (!%p1397_p9), %v1196_v44, %v1212_v63  ;;  %v1223_v60 = vld [vmem:[#allocation4 + $0x78] sm:$0xff] (!%p1397_p9) }
 0x31e   : > { %1629 = vlog2.f32 %v1156_v23  ;;  %v1197_v62 = vadd.f32 %v1171_v5, %v1133_v38  ;;  %1243 = vst.msk [vmem:[%s1753_s8 + $0x18] sm:$0xff] %vm755_vm2, %v1227_v54 }
 0x31f   : > { %v1620_v36 = vpop.eup %1619  ;;  %v1198_v46 = vadd.f32 %v1173_v39, %v1134_v27  ;;  %1244 = vst.msk [vmem:[%s1753_s8 + $0x20] sm:$0xff] %vm755_vm2, %v1228_v29 }
 0x320   : > { %v1157_v37 = vld [vmem:[#allocation3 + $0x68] sm:$0xff]  ;;  %v1622_v47 = vpop.eup %1621  ;;  %v1175_v56 = vmul.f32 0.6931472, %v1620_v36  ;;  %v1229_v17 = vsub.f32 %v1197_v62, %v1213_v2 }
 0x321   : > { %1631 = vlog2.f32 %v1157_v37  ;;  %v1177_v52 = vmul.f32 0.6931472, %v1622_v47  ;;  %v1230_v32 = vsub.f32 %v1198_v46, %v1214_v59  ;;  %v1219_v37 = vld [vmem:[#allocation4 + $0x58] sm:$0xff] }
 0x322   : > { %1633 = vlog2.f32 %v1158_v24  ;;  %v1199_v19 = vadd.f32 %v1175_v56, %v1135_v12  ;;  %1245 = vst.msk [vmem:[%s1753_s8 + $0x28] sm:$0xff] %vm755_vm2, %v1229_v17  ;;  %v1220_v24 = vld [vmem:[#allocation4 + $0x60] sm:$0xff] }
 0x323   : > { %v1624_v7 = vpop.eup %1623  ;;  %v1200_v10 = vadd.f32 %v1177_v52, %v1136_v20  ;;  %1246 = vst.msk [vmem:[%s1753_s8 + $0x30] sm:$0xff] %vm755_vm2, %v1230_v32 }
 0x324   : > { %v1159_v4 = vld [vmem:[#allocation3 + $0x78] sm:$0xff]  ;;  %v1626_v43 = vpop.eup %1625  ;;  %v1179_v55 = vmul.f32 0.6931472, %v1624_v7  ;;  %v1231_v41 = vsub.f32 %v1199_v19, %v1215_v35 }
 0x325   : > { %1635 = vlog2.f32 %v1159_v4  ;;  %v1181_v15 = vmul.f32 0.6931472, %v1626_v43  ;;  %v1232_v22 = vsub.f32 %v1200_v10, %v1216_v6  ;;  %v1221_v4 = vld [vmem:[#allocation4 + $0x68] sm:$0xff] }
 0x326   : > { %v1201_v9 = vadd.f32 %v1179_v55, %v1137_v30  ;;  %1247 = vst.msk [vmem:[%s1753_s8 + $0x38] sm:$0xff] %vm755_vm2, %v1231_v41 }
 0x327   : > { %v1628_v0 = vpop.eup %1627  ;;  %v1202_v57 = vadd.f32 %v1181_v15, %v1138_v45  ;;  %1248 = vst.msk [vmem:[%s1753_s8 + $0x40] sm:$0xff] %vm755_vm2, %v1232_v22 }
 0x328   : > { %v1630_v25 = vpop.eup %1629  ;;  %v1183_v23 = vmul.f32 0.6931472, %v1628_v0  ;;  %v1233_v58 = vsub.f32 %v1201_v9, %v1217_v14 }
 0x329   : > { %v1185_v49 = vmul.f32 0.6931472, %v1630_v25  ;;  %v1234_v61 = vsub.f32 %v1202_v57, %v1218_v13 }
 0x32a   : > { %v1203_v3 = vadd.f32 %v1183_v23, %v1139_v21  ;;  %1249 = vst.msk [vmem:[%s1753_s8 + $0x48] sm:$0xff] %vm755_vm2, %v1233_v58 }
 0x32b   : > { %v1632_v16 = vpop.eup %1631  ;;  %v1204_v42 = vadd.f32 %v1185_v49, %v1140_v33  ;;  %1250 = vst.msk [vmem:[%s1753_s8 + $0x50] sm:$0xff] %vm755_vm2, %v1234_v61 }
 0x32c   : > { %v1634_v1 = vpop.eup %1633  ;;  %v1187_v34 = vmul.f32 0.6931472, %v1632_v16  ;;  %v1235_v40 = vsub.f32 %v1203_v3, %v1219_v37 }
 0x32d   : > { %v1189_v11 = vmul.f32 0.6931472, %v1634_v1  ;;  %v1236_v50 = vsub.f32 %v1204_v42, %v1220_v24 }
 0x32e   : > { %v1205_v18 = vadd.f32 %v1187_v34, %v1141_v51  ;;  %1251 = vst.msk [vmem:[%s1753_s8 + $0x58] sm:$0xff] %vm755_vm2, %v1235_v40 }
 0x32f   : > { %v1636_v53 = vpop.eup %1635  ;;  %v1206_v8 = vadd.f32 %v1189_v11, %v1142_v28  ;;  %1252 = vst.msk [vmem:[%s1753_s8 + $0x60] sm:$0xff] %vm755_vm2, %v1236_v50 }
 0x330   : > { %v1191_v38 = vmul.f32 0.6931472, %v1636_v53  ;;  %v1237_v63 = vsub.f32 %v1205_v18, %v1221_v4 }
 0x331   : > { %v1238_v27 = vsub.f32 %v1206_v8, %v1222_v48 }
 0x332   : > { %v1207_v5 = vadd.f32 %v1191_v38, %v1143_v31  ;;  %1253 = vst.msk [vmem:[%s1753_s8 + $0x68] sm:$0xff] %vm755_vm2, %v1237_v63 }
 0x333   : > { %1254 = vst.msk [vmem:[%s1753_s8 + $0x70] sm:$0xff] %vm755_vm2, %v1238_v27 }
 0x334   : > { %v1239_v36 = vsub.f32 %v1207_v5, %v1223_v60 }
 0x336   : > { %1255 = vst.msk [vmem:[%s1753_s8 + $0x78] sm:$0xff] %vm755_vm2, %v1239_v36 }
 0x337 PF: > { %s14_s19 = sadd.s32 1, %s1675_s19   ;;  %s2308_s15 = smov %s1667_s17 }
 0x338   : > { %p11_p10 = scmp.ge.s32.totalorder %s14_s19, 8   ;;  %s2309_s16 = smov %s1671_s18 }
 0x339   : > { %s2310_s17 = smov %s2313_s20  ;;  %s2311_s18 = smov %s2317_s21 }
 0x33a   :  { %13 = sbr.rel (!%p11_p10) target bundleno = 3 (0x3), region = 83 }

</bundles_post_ra>
